<compile_context>
chip_gen: v7x
topology: tpu7x:2x2x1
jax: 0.10.0
libtpu: 0.0.40
codegen_flags: <defaults>
</compile_context>

<pallas_src>
import functools

import jax
import jax.numpy as jnp
from jax import lax
from jax.experimental import pallas as pl
from jax.experimental.pallas import tpu as pltpu

# ---- model dimensions (scaled-down analog of 3*300*300 -> 3*300 -> 120 -> 84 -> 3)
C, H, W = 3, 16, 16
IN1 = C * H * W          # 768   (production: 270000)
HID1 = C * H             # 48    (production: 900)
HID2 = 120
HID3 = 84
OUT = 3

LANE = 128               # TPU lane width
SUBLANE = 8
MXU_N = 256              # v6e/v7x MXU tile width; layer-1 N padded to this


def round_up(n, m):
    return (n + m - 1) // m * m


# Lane-dense (padded) matmul N widths.  Zero-padded weight columns + zero bias
# lanes stay exactly 0 through ReLU, so real outputs are untouched and every
# kernel store is a full, unmasked lane-dense slab.
N1P = round_up(HID1, MXU_N)   # layer-1 N: 256-aligned for the 2x256x256 MXU
N2P = round_up(HID2, LANE)
N3P = round_up(HID3, LANE)
NOP = round_up(OUT, LANE)
BMAX = max(N1P, N2P, N3P, NOP)

# Tile sizes (perf review: TK >= 1024, TM 256-512).
TK_DEFAULT = 1024
TM_MAX = 512
K_W1 = round_up(IN1, TK_DEFAULT)   # w1 rows padded ONCE, offline, in prepare_params


def _pick_vmem_limit():
    """~75% of physical VMEM: ~96 MiB on v5e/v6e (128 MiB), ~48 MiB on v7x (64 MiB)."""
    fallback = 48 * 1024 * 1024
    try:
        cap = getattr(pltpu.get_tpu_info(), "vmem_capacity_bytes", None)
        if cap:
            return max(fallback, (int(cap) * 3) // 4)
    except Exception:
        pass
    return fallback


def _spec(shape, index_map, buffer_count=None):
    """BlockSpec with optional multi-buffering; degrades gracefully if this jax
    build has no pipeline_mode / pl.Buffered."""
    if buffer_count is not None and hasattr(pl, "Buffered"):
        try:
            return pl.BlockSpec(shape, index_map,
                                pipeline_mode=pl.Buffered(buffer_count))
        except TypeError:
            pass
    return pl.BlockSpec(shape, index_map)


def _mlp_head(h, w2_ref, w3_ref, w4_ref, b_ref):
    """Bias + ReLU + the tiny VMEM-resident layers 2-4 (fused epilogue).

    h: (tm, N1P) f32 pre-bias layer-1 activations.  Bias/ReLU stay in f32 on
    the VPU (v5e has no bf16 VPU path); cast to bf16 only at each MXU input.
    """
    b = b_ref[...]                                        # (4, BMAX) f32, resident
    h = jnp.maximum(h + b[0:1, :N1P], 0.0)
    h = jnp.dot(h.astype(jnp.bfloat16), w2_ref[...],
                preferred_element_type=jnp.float32) + b[1:2, :N2P]
    h = jnp.maximum(h, 0.0)
    h = jnp.dot(h.astype(jnp.bfloat16), w3_ref[...],
                preferred_element_type=jnp.float32) + b[2:3, :N3P]
    h = jnp.maximum(h, 0.0)
    return jnp.dot(h.astype(jnp.bfloat16), w4_ref[...],
                   preferred_element_type=jnp.float32) + b[3:4, :NOP]


def mlp_kernel_single(x_ref, w1_ref, w2_ref, w3_ref, w4_ref, b_ref, o_ref):
    """Small-shape fast path: whole layer-1 K fits in one VMEM tile, so the
    full forward is one fused step per M tile (no K grid, no scratch acc)."""
    h = jnp.dot(x_ref[...].astype(jnp.bfloat16), w1_ref[...],
                preferred_element_type=jnp.float32)
    o_ref[...] = _mlp_head(h, w2_ref, w3_ref, w4_ref, b_ref)


def mlp_kernel_gridded(x_ref, w1_ref, w2_ref, w3_ref, w4_ref, b_ref, o_ref,
                       acc_ref, *, k_rem):
    """Production path: grid = (M tiles, K tiles).  Layer 1 is K-tiled into an
    f32 VMEM accumulator; bias+ReLU and layers 2-4 run in the last-K epilogue.

    k_rem (static Python int) = IN1 % tk.  If nonzero, the last K tile of x is
    ragged: its out-of-bounds columns hold stale VMEM (possibly NaN/Inf), so we
    zero-mask them rather than rely on "garbage * zero-padded w1 rows".
    """
    k = pl.program_id(1)
    n_k = pl.num_programs(1)

    @pl.when(k == 0)
    def _():
        acc_ref[...] = jnp.zeros_like(acc_ref)

    xt = x_ref[...]                                       # (tm, tk) f32
    if k_rem:
        col = lax.broadcasted_iota(jnp.int32, xt.shape, 1)
        keep = (col < k_rem) | (k < n_k - 1)
        xt = jnp.where(keep, xt, 0.0)

    # Layer-1 partial product for this K tile: bf16 x bf16 -> f32 accumulate.
    acc_ref[...] += jnp.dot(xt.astype(jnp.bfloat16), w1_ref[...],
                            preferred_element_type=jnp.float32)

    @pl.when(k == n_k - 1)
    def _():
        o_ref[...] = _mlp_head(acc_ref[...], w2_ref, w3_ref, w4_ref, b_ref)


def mlp_forward(x, packed_params, *, tk_max=TK_DEFAULT, tm_max=TM_MAX):
    """x: (B, C, H, W) float32 NCHW.  Returns (B, OUT) float32 logits."""
    w1, w2, w3, w4, bias = packed_params
    B = x.shape[0]
    x_flat = x.reshape(B, -1)                             # torch.flatten(x, 1)
    assert x_flat.shape[1] == IN1, x_flat.shape

    # Pad batch rows only up to a sublane multiple (<= 7 extra rows).  No K
    # padding and no bf16 pre-pass: the kernel streams f32 x directly and casts
    # on the VPU, so there is no per-call HBM materialization of a padded x.
    mp = round_up(B, SUBLANE)
    if mp != B:
        x_flat = jnp.pad(x_flat, ((0, mp - B), (0, 0)))

    # NOTE: on v7x (2 TensorCores) a batch that fills only one M tile leaves a
    # core idle; splitting that tile would double w1 HBM traffic on 1-TC chips,
    # so we keep one tile per tm_max rows and rely on large batches for 2-TC use.
    tm = min(tm_max, mp)
    grid_m = pl.cdiv(mp, tm)

    vmem_limit = _pick_vmem_limit()
    single_step = (IN1 <= tk_max) and (IN1 % SUBLANE == 0)

    def run(multi_buffer):
        mb = (lambda n: n) if multi_buffer else (lambda n: None)
        if single_step:
            kernel = mlp_kernel_single
            grid = (grid_m,)
            in_specs = [
                pl.BlockSpec((tm, IN1), lambda i: (i, 0)),        # x tile (f32)
                _spec((IN1, N1P), lambda i: (0, 0), mb(1)),       # w1 (resident)
                _spec((N1P, N2P), lambda i: (0, 0), mb(1)),       # w2 (resident)
                _spec((N2P, N3P), lambda i: (0, 0), mb(1)),       # w3 (resident)
                _spec((N3P, NOP), lambda i: (0, 0), mb(1)),       # w4 (resident)
                _spec((4, BMAX), lambda i: (0, 0), mb(1)),        # packed biases
            ]
            out_spec = pl.BlockSpec((tm, NOP), lambda i: (i, 0))
            scratch = []
            dims = ("parallel",)
        else:
            tk = min(tk_max, K_W1)
            assert tk % LANE == 0 or tk == IN1, tk
            grid_k = pl.cdiv(IN1, tk)
            assert grid_k * tk <= w1.shape[0], (grid_k, tk, w1.shape)
            kernel = functools.partial(mlp_kernel_gridded, k_rem=IN1 % tk)
            grid = (grid_m, grid_k)
            in_specs = [
                pl.BlockSpec((tm, tk), lambda i, k: (i, k)),      # x tile (f32)
                _spec((tk, N1P), lambda i, k: (k, 0), mb(3)),     # w1 K-tile, 3-deep
                _spec((N1P, N2P), lambda i, k: (0, 0), mb(1)),    # w2 (resident)
                _spec((N2P, N3P), lambda i, k: (0, 0), mb(1)),    # w3 (resident)
                _spec((N3P, NOP), lambda i, k: (0, 0), mb(1)),    # w4 (resident)
                _spec((4, BMAX), lambda i, k: (0, 0), mb(1)),     # packed biases
            ]
            out_spec = pl.BlockSpec((tm, NOP), lambda i, k: (i, 0))
            scratch = [pltpu.VMEM((tm, N1P), jnp.float32)]
            dims = ("parallel", "arbitrary")

        return pl.pallas_call(
            kernel,
            out_shape=jax.ShapeDtypeStruct((mp, NOP), jnp.float32),
            grid_spec=pltpu.PrefetchScalarGridSpec(
                num_scalar_prefetch=0,
                grid=grid,
                in_specs=in_specs,
                out_specs=out_spec,
                scratch_shapes=scratch,
            ),
            compiler_params=pltpu.CompilerParams(
                dimension_semantics=dims,
                vmem_limit_bytes=vmem_limit,
            ),
        )(x_flat, w1, w2, w3, w4, bias)

    try:
        out_padded = run(True)
    except Exception:
        # pipeline_mode / pl.Buffered rejected by this jax build: retry with
        # default double-buffering everywhere (structure/tiling unchanged).
        out_padded = run(False)

    return out_padded[:B, :OUT]


def init_params(key):
    """Deterministic init mimicking nn.Linear default: U(-1/sqrt(fan_in), +).

    Weights stored transposed, (in_features, out_features), so y = x @ W + b.
    """
    def linear(key, fan_in, fan_out):
        kw, kb = jax.random.split(key)
        bound = 1.0 / jnp.sqrt(fan_in)
        w = jax.random.uniform(kw, (fan_in, fan_out), jnp.float32, -bound, bound)
        b = jax.random.uniform(kb, (1, fan_out), jnp.float32, -bound, bound)
        return w, b

    k1, k2, k3, k4 = jax.random.split(key, 4)
    w1, b1 = linear(k1, IN1, HID1)
    w2, b2 = linear(k2, HID1, HID2)
    w3, b3 = linear(k3, HID2, HID3)
    w4, b4 = linear(k4, HID3, OUT)
    return (w1, b1, w2, b2, w3, b3, w4, b4)


def prepare_params(params):
    """One-time pack: pad to lane-dense widths (layer-1 K rows to K_W1, all N
    dims to 128/256 multiples), cast weights to bf16, pack biases into one
    (4, BMAX) f32 block.  Zero-padded weight columns and zero bias lanes keep
    padded outputs exactly 0 through ReLU, so the real logits are unaffected.
    """
    w1, b1, w2, b2, w3, b3, w4, b4 = params

    def pad2(a, rows, cols):
        return jnp.zeros((rows, cols), a.dtype).at[:a.shape[0], :a.shape[1]].set(a)

    w1p = pad2(w1, K_W1, N1P).astype(jnp.bfloat16)
    w2p = pad2(w2, N1P, N2P).astype(jnp.bfloat16)
    w3p = pad2(w3, N2P, N3P).astype(jnp.bfloat16)
    w4p = pad2(w4, N3P, NOP).astype(jnp.bfloat16)
    bias = jnp.concatenate(
        [pad2(b1, 1, BMAX), pad2(b2, 1, BMAX),
         pad2(b3, 1, BMAX), pad2(b4, 1, BMAX)], axis=0)   # (4, BMAX) float32
    return (w1p, w2p, w3p, w4p, bias)


def mlp_reference(x, params):
    """Pure-JAX reference mirroring the PyTorch forward with the same bf16
    weight/activation quantization and f32 accumulation as the kernel."""
    w1, b1, w2, b2, w3, b3, w4, b4 = params
    bf = jnp.bfloat16
    h = x.reshape(x.shape[0], -1)
    h = jnp.maximum(jnp.dot(h.astype(bf), w1.astype(bf),
                            preferred_element_type=jnp.float32) + b1, 0.0)
    h = jnp.maximum(jnp.dot(h.astype(bf), w2.astype(bf),
                            preferred_element_type=jnp.float32) + b2, 0.0)
    h = jnp.maximum(jnp.dot(h.astype(bf), w3.astype(bf),
                            preferred_element_type=jnp.float32) + b3, 0.0)
    return jnp.dot(h.astype(bf), w4.astype(bf),
                   preferred_element_type=jnp.float32) + b4


if __name__ == "__main__":
    key = jax.random.PRNGKey(0)
    k_params, k_x = jax.random.split(key)

    raw_params = init_params(k_params)
    packed_params = prepare_params(raw_params)

    x = jax.random.normal(k_x, (2, C, H, W), jnp.float32)   # batch=2, NCHW
    ref = mlp_reference(x, raw_params)

    # Default path: single fused step (IN1=768 <= TK_DEFAULT=1024).
    out = jax.block_until_ready(mlp_forward(x, packed_params))
    assert out.shape == (2, OUT), out.shape
    err = float(jnp.max(jnp.abs(out - ref)))
    assert jnp.allclose(out, ref, atol=2e-3, rtol=2e-3), (
        f"single-step path mismatch vs reference, max abs err {err}")

    # Also exercise the production (K-tiled accumulator) path: tk=512 gives two
    # K tiles with a ragged last tile (768 % 512 = 256), covering the mask path.
    out_g = jax.block_until_ready(mlp_forward(x, packed_params, tk_max=512))
    err_g = float(jnp.max(jnp.abs(out_g - ref)))
    assert jnp.allclose(out_g, ref, atol=2e-3, rtol=2e-3), (
        f"gridded path mismatch vs reference, max abs err {err_g}")

    print("KERNEL_OK")
</pallas_src>

<mosaic_0001>
module attributes {stable_mosaic.version = 11 : i64} {
  func.func @mlp_kernel_single(%arg0: i32, %arg1: memref<8x768xf32, #tpu.memory_space<vmem>>, %arg2: memref<768x256xbf16, #tpu.memory_space<vmem>>, %arg3: memref<256x128xbf16, #tpu.memory_space<vmem>>, %arg4: memref<128x128xbf16, #tpu.memory_space<vmem>>, %arg5: memref<128x128xbf16, #tpu.memory_space<vmem>>, %arg6: memref<4x256xf32, #tpu.memory_space<vmem>>, %arg7: memref<8x128xf32, #tpu.memory_space<vmem>>) attributes {dimension_semantics = [#tpu.dimension_semantics<parallel>], iteration_bounds = array<i64: 1>, scalar_prefetch = 0 : i64, scratch_operands = 0 : i64, tpu.core_type = #tpu.core_type<tc>, window_params = [{transform_indices = @transform_0, window_bounds = array<i64: 8, 768>}, {pipeline_mode = #tpu.pipeline_mode<synchronous>, transform_indices = @transform_1, window_bounds = array<i64: 768, 256>}, {pipeline_mode = #tpu.pipeline_mode<synchronous>, transform_indices = @transform_2, window_bounds = array<i64: 256, 128>}, {pipeline_mode = #tpu.pipeline_mode<synchronous>, transform_indices = @transform_3, window_bounds = array<i64: 128, 128>}, {pipeline_mode = #tpu.pipeline_mode<synchronous>, transform_indices = @transform_4, window_bounds = array<i64: 128, 128>}, {pipeline_mode = #tpu.pipeline_mode<synchronous>, transform_indices = @transform_5, window_bounds = array<i64: 4, 256>}, {transform_indices = @transform_6, window_bounds = array<i64: 8, 128>}]} {
    %c0 = arith.constant 0 : index
    %c0_0 = arith.constant 0 : index
    %0 = vector.load %arg1[%c0, %c0_0] : memref<8x768xf32, #tpu.memory_space<vmem>>, vector<8x768xf32>
    %1 = arith.truncf %0 : vector<8x768xf32> to vector<8x768xbf16>
    %c0_1 = arith.constant 0 : index
    %c0_2 = arith.constant 0 : index
    %2 = vector.load %arg2[%c0_1, %c0_2] : memref<768x256xbf16, #tpu.memory_space<vmem>>, vector<768x256xbf16>
    %cst = arith.constant dense<0.000000e+00> : vector<8x256xf32>
    %3 = tpu.matmul %1, %2, %cst {dimension_numbers = #tpu.dot_dimension_numbers<[1], [0], [0], [1], [0, 0, 1, 1], [], []>} : vector<8x768xbf16>, vector<768x256xbf16>, vector<8x256xf32> -> vector<8x256xf32>
    %c0_3 = arith.constant 0 : index
    %c0_4 = arith.constant 0 : index
    %4 = vector.load %arg6[%c0_3, %c0_4] : memref<4x256xf32, #tpu.memory_space<vmem>>, vector<4x256xf32>
    %5 = vector.extract_strided_slice %4 {offsets = [0, 0], sizes = [1, 256], strides = [1, 1]} : vector<4x256xf32> to vector<1x256xf32>
    %6 = vector.broadcast %5 : vector<1x256xf32> to vector<8x256xf32>
    %7 = arith.addf %3, %6 : vector<8x256xf32>
    %cst_5 = arith.constant 0.000000e+00 : f32
    %8 = vector.broadcast %cst_5 : f32 to vector<8x256xf32>
    %9 = arith.maximumf %7, %8 : vector<8x256xf32>
    %10 = arith.truncf %9 : vector<8x256xf32> to vector<8x256xbf16>
    %c0_6 = arith.constant 0 : index
    %c0_7 = arith.constant 0 : index
    %11 = vector.load %arg3[%c0_6, %c0_7] : memref<256x128xbf16, #tpu.memory_space<vmem>>, vector<256x128xbf16>
    %cst_8 = arith.constant dense<0.000000e+00> : vector<8x128xf32>
    %12 = tpu.matmul %10, %11, %cst_8 {dimension_numbers = #tpu.dot_dimension_numbers<[1], [0], [0], [1], [0, 0, 1, 1], [], []>} : vector<8x256xbf16>, vector<256x128xbf16>, vector<8x128xf32> -> vector<8x128xf32>
    %13 = vector.extract_strided_slice %4 {offsets = [1, 0], sizes = [1, 128], strides = [1, 1]} : vector<4x256xf32> to vector<1x128xf32>
    %14 = vector.broadcast %13 : vector<1x128xf32> to vector<8x128xf32>
    %15 = arith.addf %12, %14 : vector<8x128xf32>
    %cst_9 = arith.constant 0.000000e+00 : f32
    %16 = vector.broadcast %cst_9 : f32 to vector<8x128xf32>
    %17 = arith.maximumf %15, %16 : vector<8x128xf32>
    %18 = arith.truncf %17 : vector<8x128xf32> to vector<8x128xbf16>
    %c0_10 = arith.constant 0 : index
    %c0_11 = arith.constant 0 : index
    %19 = vector.load %arg4[%c0_10, %c0_11] : memref<128x128xbf16, #tpu.memory_space<vmem>>, vector<128x128xbf16>
    %cst_12 = arith.constant dense<0.000000e+00> : vector<8x128xf32>
    %20 = tpu.matmul %18, %19, %cst_12 {dimension_numbers = #tpu.dot_dimension_numbers<[1], [0], [0], [1], [0, 0, 1, 1], [], []>} : vector<8x128xbf16>, vector<128x128xbf16>, vector<8x128xf32> -> vector<8x128xf32>
    %21 = vector.extract_strided_slice %4 {offsets = [2, 0], sizes = [1, 128], strides = [1, 1]} : vector<4x256xf32> to vector<1x128xf32>
    %22 = vector.broadcast %21 : vector<1x128xf32> to vector<8x128xf32>
    %23 = arith.addf %20, %22 : vector<8x128xf32>
    %cst_13 = arith.constant 0.000000e+00 : f32
    %24 = vector.broadcast %cst_13 : f32 to vector<8x128xf32>
    %25 = arith.maximumf %23, %24 : vector<8x128xf32>
    %26 = arith.truncf %25 : vector<8x128xf32> to vector<8x128xbf16>
    %c0_14 = arith.constant 0 : index
    %c0_15 = arith.constant 0 : index
    %27 = vector.load %arg5[%c0_14, %c0_15] : memref<128x128xbf16, #tpu.memory_space<vmem>>, vector<128x128xbf16>
    %cst_16 = arith.constant dense<0.000000e+00> : vector<8x128xf32>
    %28 = tpu.matmul %26, %27, %cst_16 {dimension_numbers = #tpu.dot_dimension_numbers<[1], [0], [0], [1], [0, 0, 1, 1], [], []>} : vector<8x128xbf16>, vector<128x128xbf16>, vector<8x128xf32> -> vector<8x128xf32>
    %29 = vector.extract_strided_slice %4 {offsets = [3, 0], sizes = [1, 128], strides = [1, 1]} : vector<4x256xf32> to vector<1x128xf32>
    %30 = vector.broadcast %29 : vector<1x128xf32> to vector<8x128xf32>
    %31 = arith.addf %28, %30 : vector<8x128xf32>
    %c0_17 = arith.constant 0 : index
    %c0_18 = arith.constant 0 : index
    %32 = vector.load %arg7[%c0_17, %c0_18] : memref<8x128xf32, #tpu.memory_space<vmem>>, vector<8x128xf32>
    tpu.vector_store %arg7[%c0_17, %c0_18], %31 {strides = array<i32>} : memref<8x128xf32, #tpu.memory_space<vmem>>, vector<8x128xf32>,
    return
  }
  func.func @transform_0(%arg0: i32) -> (i32, i32) {
    %c0_i32 = arith.constant 0 : i32
    %c0_i32_0 = arith.constant 0 : i32
    return %arg0, %c0_i32 : i32, i32
  }
  func.func @transform_1(%arg0: i32) -> (i32, i32) {
    %c0_i32 = arith.constant 0 : i32
    %c0_i32_0 = arith.constant 0 : i32
    %c0_i32_1 = arith.constant 0 : i32
    return %c0_i32, %c0_i32_0 : i32, i32
  }
  func.func @transform_2(%arg0: i32) -> (i32, i32) {
    %c0_i32 = arith.constant 0 : i32
    %c0_i32_0 = arith.constant 0 : i32
    %c0_i32_1 = arith.constant 0 : i32
    return %c0_i32, %c0_i32_0 : i32, i32
  }
  func.func @transform_3(%arg0: i32) -> (i32, i32) {
    %c0_i32 = arith.constant 0 : i32
    %c0_i32_0 = arith.constant 0 : i32
    %c0_i32_1 = arith.constant 0 : i32
    return %c0_i32, %c0_i32_0 : i32, i32
  }
  func.func @transform_4(%arg0: i32) -> (i32, i32) {
    %c0_i32 = arith.constant 0 : i32
    %c0_i32_0 = arith.constant 0 : i32
    %c0_i32_1 = arith.constant 0 : i32
    return %c0_i32, %c0_i32_0 : i32, i32
  }
  func.func @transform_5(%arg0: i32) -> (i32, i32) {
    %c0_i32 = arith.constant 0 : i32
    %c0_i32_0 = arith.constant 0 : i32
    %c0_i32_1 = arith.constant 0 : i32
    return %c0_i32, %c0_i32_0 : i32, i32
  }
  func.func @transform_6(%arg0: i32) -> (i32, i32) {
    %c0_i32 = arith.constant 0 : i32
    %c0_i32_0 = arith.constant 0 : i32
    return %arg0, %c0_i32 : i32, i32
  }
}

module attributes {stable_mosaic.version = 11 : i64} {
  func.func @mlp_kernel_single(%arg0: i32, %arg1: memref<8x768xf32, #tpu.memory_space<vmem>>, %arg2: memref<768x256xbf16, #tpu.memory_space<vmem>>, %arg3: memref<256x128xbf16, #tpu.memory_space<vmem>>, %arg4: memref<128x128xbf16, #tpu.memory_space<vmem>>, %arg5: memref<128x128xbf16, #tpu.memory_space<vmem>>, %arg6: memref<4x256xf32, #tpu.memory_space<vmem>>, %arg7: memref<8x128xf32, #tpu.memory_space<vmem>>) attributes {dimension_semantics = [#tpu.dimension_semantics<parallel>], iteration_bounds = array<i64: 1>, scalar_prefetch = 0 : i64, scratch_operands = 0 : i64, tpu.core_type = #tpu.core_type<tc>, window_params = [{transform_indices = @transform_0, window_bounds = array<i64: 8, 768>}, {transform_indices = @transform_1, window_bounds = array<i64: 768, 256>}, {pipeline_mode = #tpu.pipeline_mode<synchronous>, transform_indices = @transform_2, window_bounds = array<i64: 256, 128>}, {pipeline_mode = #tpu.pipeline_mode<synchronous>, transform_indices = @transform_3, window_bounds = array<i64: 128, 128>}, {pipeline_mode = #tpu.pipeline_mode<synchronous>, transform_indices = @transform_4, window_bounds = array<i64: 128, 128>}, {pipeline_mode = #tpu.pipeline_mode<synchronous>, transform_indices = @transform_5, window_bounds = array<i64: 4, 256>}, {transform_indices = @transform_6, window_bounds = array<i64: 8, 128>}]} {
    %c0 = arith.constant 0 : index
    %c0_0 = arith.constant 0 : index
    %0 = vector.load %arg1[%c0, %c0_0] : memref<8x768xf32, #tpu.memory_space<vmem>>, vector<8x768xf32>
    %1 = arith.truncf %0 : vector<8x768xf32> to vector<8x768xbf16>
    %c0_1 = arith.constant 0 : index
    %c0_2 = arith.constant 0 : index
    %2 = vector.load %arg2[%c0_1, %c0_2] : memref<768x256xbf16, #tpu.memory_space<vmem>>, vector<768x256xbf16>
    %cst = arith.constant dense<0.000000e+00> : vector<8x256xf32>
    %3 = tpu.matmul %1, %2, %cst {dimension_numbers = #tpu.dot_dimension_numbers<[1], [0], [0], [1], [0, 0, 1, 1], [], []>} : vector<8x768xbf16>, vector<768x256xbf16>, vector<8x256xf32> -> vector<8x256xf32>
    %c0_3 = arith.constant 0 : index
    %c0_4 = arith.constant 0 : index
    %4 = vector.load %arg6[%c0_3, %c0_4] : memref<4x256xf32, #tpu.memory_space<vmem>>, vector<4x256xf32>
    %5 = vector.extract_strided_slice %4 {offsets = [0, 0], sizes = [1, 256], strides = [1, 1]} : vector<4x256xf32> to vector<1x256xf32>
    %6 = vector.broadcast %5 : vector<1x256xf32> to vector<8x256xf32>
    %7 = arith.addf %3, %6 : vector<8x256xf32>
    %cst_5 = arith.constant 0.000000e+00 : f32
    %8 = vector.broadcast %cst_5 : f32 to vector<8x256xf32>
    %9 = arith.maximumf %7, %8 : vector<8x256xf32>
    %10 = arith.truncf %9 : vector<8x256xf32> to vector<8x256xbf16>
    %c0_6 = arith.constant 0 : index
    %c0_7 = arith.constant 0 : index
    %11 = vector.load %arg3[%c0_6, %c0_7] : memref<256x128xbf16, #tpu.memory_space<vmem>>, vector<256x128xbf16>
    %cst_8 = arith.constant dense<0.000000e+00> : vector<8x128xf32>
    %12 = tpu.matmul %10, %11, %cst_8 {dimension_numbers = #tpu.dot_dimension_numbers<[1], [0], [0], [1], [0, 0, 1, 1], [], []>} : vector<8x256xbf16>, vector<256x128xbf16>, vector<8x128xf32> -> vector<8x128xf32>
    %13 = vector.extract_strided_slice %4 {offsets = [1, 0], sizes = [1, 128], strides = [1, 1]} : vector<4x256xf32> to vector<1x128xf32>
    %14 = vector.broadcast %13 : vector<1x128xf32> to vector<8x128xf32>
    %15 = arith.addf %12, %14 : vector<8x128xf32>
    %cst_9 = arith.constant 0.000000e+00 : f32
    %16 = vector.broadcast %cst_9 : f32 to vector<8x128xf32>
    %17 = arith.maximumf %15, %16 : vector<8x128xf32>
    %18 = arith.truncf %17 : vector<8x128xf32> to vector<8x128xbf16>
    %c0_10 = arith.constant 0 : index
    %c0_11 = arith.constant 0 : index
    %19 = vector.load %arg4[%c0_10, %c0_11] : memref<128x128xbf16, #tpu.memory_space<vmem>>, vector<128x128xbf16>
    %cst_12 = arith.constant dense<0.000000e+00> : vector<8x128xf32>
    %20 = tpu.matmul %18, %19, %cst_12 {dimension_numbers = #tpu.dot_dimension_numbers<[1], [0], [0], [1], [0, 0, 1, 1], [], []>} : vector<8x128xbf16>, vector<128x128xbf16>, vector<8x128xf32> -> vector<8x128xf32>
    %21 = vector.extract_strided_slice %4 {offsets = [2, 0], sizes = [1, 128], strides = [1, 1]} : vector<4x256xf32> to vector<1x128xf32>
    %22 = vector.broadcast %21 : vector<1x128xf32> to vector<8x128xf32>
    %23 = arith.addf %20, %22 : vector<8x128xf32>
    %cst_13 = arith.constant 0.000000e+00 : f32
    %24 = vector.broadcast %cst_13 : f32 to vector<8x128xf32>
    %25 = arith.maximumf %23, %24 : vector<8x128xf32>
    %26 = arith.truncf %25 : vector<8x128xf32> to vector<8x128xbf16>
    %c0_14 = arith.constant 0 : index
    %c0_15 = arith.constant 0 : index
    %27 = vector.load %arg5[%c0_14, %c0_15] : memref<128x128xbf16, #tpu.memory_space<vmem>>, vector<128x128xbf16>
    %cst_16 = arith.constant dense<0.000000e+00> : vector<8x128xf32>
    %28 = tpu.matmul %26, %27, %cst_16 {dimension_numbers = #tpu.dot_dimension_numbers<[1], [0], [0], [1], [0, 0, 1, 1], [], []>} : vector<8x128xbf16>, vector<128x128xbf16>, vector<8x128xf32> -> vector<8x128xf32>
    %29 = vector.extract_strided_slice %4 {offsets = [3, 0], sizes = [1, 128], strides = [1, 1]} : vector<4x256xf32> to vector<1x128xf32>
    %30 = vector.broadcast %29 : vector<1x128xf32> to vector<8x128xf32>
    %31 = arith.addf %28, %30 : vector<8x128xf32>
    %c0_17 = arith.constant 0 : index
    %c0_18 = arith.constant 0 : index
    %32 = vector.load %arg7[%c0_17, %c0_18] : memref<8x128xf32, #tpu.memory_space<vmem>>, vector<8x128xf32>
    tpu.vector_store %arg7[%c0_17, %c0_18], %31 {strides = array<i32>} : memref<8x128xf32, #tpu.memory_space<vmem>>, vector<8x128xf32>,
    return
  }
  func.func @transform_0(%arg0: i32) -> (i32, i32) {
    %c0_i32 = arith.constant 0 : i32
    %c0_i32_0 = arith.constant 0 : i32
    return %arg0, %c0_i32 : i32, i32
  }
  func.func @transform_1(%arg0: i32) -> (i32, i32) {
    %c0_i32 = arith.constant 0 : i32
    %c0_i32_0 = arith.constant 0 : i32
    %c0_i32_1 = arith.constant 0 : i32
    return %c0_i32, %c0_i32_0 : i32, i32
  }
  func.func @transform_2(%arg0: i32) -> (i32, i32) {
    %c0_i32 = arith.constant 0 : i32
    %c0_i32_0 = arith.constant 0 : i32
    %c0_i32_1 = arith.constant 0 : i32
    return %c0_i32, %c0_i32_0 : i32, i32
  }
  func.func @transform_3(%arg0: i32) -> (i32, i32) {
    %c0_i32 = arith.constant 0 : i32
    %c0_i32_0 = arith.constant 0 : i32
    %c0_i32_1 = arith.constant 0 : i32
    return %c0_i32, %c0_i32_0 : i32, i32
  }
  func.func @transform_4(%arg0: i32) -> (i32, i32) {
    %c0_i32 = arith.constant 0 : i32
    %c0_i32_0 = arith.constant 0 : i32
    %c0_i32_1 = arith.constant 0 : i32
    return %c0_i32, %c0_i32_0 : i32, i32
  }
  func.func @transform_5(%arg0: i32) -> (i32, i32) {
    %c0_i32 = arith.constant 0 : i32
    %c0_i32_0 = arith.constant 0 : i32
    %c0_i32_1 = arith.constant 0 : i32
    return %c0_i32, %c0_i32_0 : i32, i32
  }
  func.func @transform_6(%arg0: i32) -> (i32, i32) {
    %c0_i32 = arith.constant 0 : i32
    %c0_i32_0 = arith.constant 0 : i32
    return %arg0, %c0_i32 : i32, i32
  }
}

</mosaic_0001>

<bundles_post_ra>
// kernel: tpu_custom_call.1
= control target key start
LH: loop header
LB: loop body
LE: loop exit
PB: predicated region body
PF: predicated region fallthrough
CT: control target
= control target key end

     0   :  { %11 = vsyncpa [#allocation3], 0  ;;  %s1948_s0 = inlined_call_operand.hbm [shape: f32[8,768], index: 0, kind: input, shape index: {}]   ;;  %s1949_s1 = inlined_call_operand.hbm [shape: bf16[1024,256], index: 1, kind: input, shape index: {}]   ;;  %s1950_s2 = inlined_call_operand.hbm [shape: bf16[256,128], index: 2, kind: input, shape index: {}]   ;;  %s1951_s3 = inlined_call_operand.hbm [shape: bf16[128,128], index: 3, kind: input, shape index: {}]   ;;  %s1952_s4 = inlined_call_operand.hbm [shape: bf16[128,128], index: 4, kind: input, shape index: {}]   ;;  %s1953_s5 = inlined_call_operand.vmem [shape: f32[4,256], index: 5, kind: input, shape index: {}]   ;;  %s1954_s6 = inlined_call_operand.hbm [shape: f32[8,128], index: 6, kind: output, shape index: {}]  }
   0x1   :  { %12 = vsyncpa [#allocation6], 0 }
   0x2   :  { %13 = vsyncpa [#allocation9], 0 }
   0x3   :  { %14 = vsyncpa [#allocation4], 0  ;;  %s1780_s21 = smov [#allocation5]   ;;  %s1640_s25 = scalar_lea.hbm %s1949_s1, 12288 }
   0x4   :  { %s30_s22 = sshll.u32 %s1780_s21, 4  ;;  %p1641_p0 = scmp.ne.s32.totalorder %s1949_s1, %s1640_s25  ;;  %s31_s22 = int_to_ptr.vmem [resolvable:$true] %s30_s22 }
   0x5   :  { %s1642_s30 = scalar_lea.hbm %s1949_s1, 16384  ;;  %p1644_p2 = scmp.lt.u32.totalorder %s1640_s25, %s1949_s1 }
   0x6   :  { %p1643_p1 = scmp.lt.u32.totalorder %s1642_s30, %s1640_s25 }
   0x8   :  { %p1645_p3 = por %p1644_p2, %p1643_p1 }
   0xa   :  { %p1646_p4 = pnand %p1645_p3, %p1641_p0 }
   0xc   :  { %1649 = shalt.err (!%p1646_p4)
}
   0xd   :  { %s1650_s9 = scalar_lea.vmem %s31_s22, 12288  ;;  %p1655_p6 = scmp.lt.s32.totalorder %s31_s22, %s31_s22 }
   0xe   :  { %p1651_p5 = scmp.ne.s32.totalorder %s31_s22, %s1650_s9  ;;  %p1656_p7 = scmp.lt.s32.totalorder %s1650_s9, %s1650_s9 }
  0x10   :  { %p1657_p8 = por %p1656_p7, %p1655_p6 }
  0x12   :  { %p1658_p9 = pnand %p1657_p8, %p1651_p5 }
  0x14   :  { %1661 = shalt.err (!%p1658_p9)
}
  0x15   :  { %s1781_s10 = smov 128   ;;  %s1782_s11 = smov 8  }
  0x16   :  { %36 = dma.hbm_to_vmem [thread:$0]  %s1949_s1, 12288, %s31_s22, [#allocation6], %s1781_s10, %s1781_s10, %s1782_s11  }
  0x17   :  { %s1783_s14 = smov [#allocation8]   ;;  %s1784_s16 = smov [#allocation2]  }
  0x18   :  { %s54_s15 = sshll.u32 %s1783_s14, 4  ;;  %s21_s17 = sshll.u32 %s1784_s16, 4  ;;  %s55_s15 = int_to_ptr.vmem [resolvable:$true] %s54_s15  ;;  %s22_s17 = int_to_ptr.vmem [resolvable:$true] %s21_s17 }
  0x19   :  { %s1662_s20 = scalar_lea.hbm %s1951_s3, 1024 }
  0x1a   :  { %p1663_p10 = scmp.ne.s32.totalorder %s1951_s3, %s1662_s20  ;;  %p1666_p11 = scmp.lt.u32.totalorder %s1662_s20, %s1951_s3 }
  0x1c   :  { %p1668_p12 = pnand %p1666_p11, %p1663_p10 }
  0x1e   :  { %1671 = shalt.err (!%p1668_p12)
}
  0x1f   :  { %s1672_s1 = scalar_lea.vmem %s55_s15, 1024  ;;  %p1677_p0 = scmp.lt.s32.totalorder %s55_s15, %s55_s15 }
  0x20   :  { %p1673_p13 = scmp.ne.s32.totalorder %s55_s15, %s1672_s1  ;;  %p1678_p1 = scmp.lt.s32.totalorder %s1672_s1, %s1672_s1 }
  0x22   :  { %p1679_p2 = por %p1678_p1, %p1677_p0 }
  0x24   :  { %p1680_p3 = pnand %p1679_p2, %p1673_p13 }
  0x26   :  { %1683 = shalt.err (!%p1680_p3)
}
  0x27   :  { %s1785_s22 = smov 64   ;;  %s1786_s26 = smov 4  }
  0x28   :  { %60 = dma.hbm_to_vmem [thread:$0]  %s1951_s3, 1024, %s55_s15, [#allocation9], %s1785_s22, %s1785_s22, %s1786_s26  }
  0x29   :  { %s1684_s7 = scalar_lea.hbm %s1948_s0, 768 }
  0x2a   :  { %p1685_p4 = scmp.ne.s32.totalorder %s1948_s0, %s1684_s7  ;;  %p1688_p5 = scmp.lt.u32.totalorder %s1684_s7, %s1948_s0 }
  0x2c   :  { %p1690_p6 = pnand %p1688_p5, %p1685_p4 }
  0x2e   :  { %1693 = shalt.err (!%p1690_p6)
}
  0x2f   :  { %s1694_s12 = scalar_lea.vmem %s22_s17, 768  ;;  %p1699_p8 = scmp.lt.s32.totalorder %s22_s17, %s22_s17 }
  0x30   :  { %p1695_p7 = scmp.ne.s32.totalorder %s22_s17, %s1694_s12  ;;  %p1700_p9 = scmp.lt.s32.totalorder %s1694_s12, %s1694_s12 }
  0x32   :  { %p1701_p10 = por %p1700_p9, %p1699_p8 }
  0x34   :  { %p1702_p11 = pnand %p1701_p10, %p1695_p7 }
  0x36   :  { %1705 = shalt.err (!%p1702_p11)
}
  0x37   :  { %24 = dma.hbm_to_vmem [thread:$0]  %s1948_s0, 768, %s22_s17, [#allocation3]  }
  0x38   :  { %s1787_s14 = smov [#allocation7]   ;;  %s1788_s16 = smov [#allocation10]  }
  0x39   :  { %s42_s15 = sshll.u32 %s1787_s14, 4  ;;  %s66_s18 = sshll.u32 %s1788_s16, 4  ;;  %s43_s15 = int_to_ptr.vmem [resolvable:$true] %s42_s15  ;;  %s67_s18 = int_to_ptr.vmem [resolvable:$true] %s66_s18 }
  0x3a   :  { %s1706_s21 = scalar_lea.hbm %s1950_s2, 2048 }
  0x3b   :  { %p1707_p12 = scmp.ne.s32.totalorder %s1950_s2, %s1706_s21  ;;  %p1710_p13 = scmp.lt.u32.totalorder %s1706_s21, %s1950_s2 }
  0x3d   :  { %p1712_p0 = pnand %p1710_p13, %p1707_p12 }
  0x3f   :  { %1715 = shalt.err (!%p1712_p0)
}
  0x40   :  { %s1716_s0 = scalar_lea.vmem %s43_s15, 2048  ;;  %p1721_p2 = scmp.lt.s32.totalorder %s43_s15, %s43_s15 }
  0x41   :  { %p1717_p1 = scmp.ne.s32.totalorder %s43_s15, %s1716_s0  ;;  %p1722_p3 = scmp.lt.s32.totalorder %s1716_s0, %s1716_s0 }
  0x43   :  { %p1723_p4 = por %p1722_p3, %p1721_p2 }
  0x45   :  { %p1724_p5 = pnand %p1723_p4, %p1717_p1 }
  0x47   :  { %1727 = shalt.err (!%p1724_p5)
}
  0x48   :  { %48 = dma.hbm_to_vmem [thread:$0]  %s1950_s2, 2048, %s43_s15, [#allocation6], %s1785_s22, %s1785_s22, %s1786_s26  }
  0x49   :  { %s1728_s30 = scalar_lea.hbm %s1952_s4, 1024 }
  0x4a   :  { %p1729_p6 = scmp.ne.s32.totalorder %s1952_s4, %s1728_s30  ;;  %p1732_p7 = scmp.lt.u32.totalorder %s1728_s30, %s1952_s4 }
  0x4c   :  { %p1734_p8 = pnand %p1732_p7, %p1729_p6 }
  0x4e   :  { %1737 = shalt.err (!%p1734_p8)
}
  0x4f   :  { %s1738_s11 = scalar_lea.vmem %s67_s18, 1024  ;;  %p1743_p10 = scmp.lt.s32.totalorder %s67_s18, %s67_s18 }
  0x50   :  { %p1739_p9 = scmp.ne.s32.totalorder %s67_s18, %s1738_s11  ;;  %p1744_p11 = scmp.lt.s32.totalorder %s1738_s11, %s1738_s11 }
  0x52   :  { %p1745_p12 = por %p1744_p11, %p1743_p10 }
  0x54   :  { %p1746_p13 = pnand %p1745_p12, %p1739_p9 }
  0x56   :  { %1749 = shalt.err (!%p1746_p13)
}
  0x57   :  { %72 = dma.hbm_to_vmem [thread:$0]  %s1952_s4, 1024, %s67_s18, [#allocation9], %s1785_s22, %s1785_s22, %s1786_s26  }
  0x58   :  { %1772 = dma.done.wait [#allocation3], 768  }
  0x59   :  { %1773 = vsyncadd [#allocation3], 4294966528 }
  0x5a   :  { %1774 = dma.done.wait [#allocation6], 14336  }
  0x5b   :  { %1775 = vsyncadd [#allocation6], 4294952960 }
  0x5c   :  { %1776 = dma.done.wait [#allocation9], 2048  }
  0x5d   :  { %1777 = vsyncadd [#allocation9], 4294965248  ;;  %v1464_v0 = vld [vmem:[#allocation5 + $0x104] ss:$8 sps:$4 sm:$0xff]   ;;  %v1466_v1 = vld [vmem:[#allocation5 + $0x100] ss:$8 sps:$4 sm:$0xff]  }
  0x5e   :  { %740 = vmatprep.subr.bf16.mxu0 %v1464_v0  ;;  %v1467_v2 = vld [vmem:[#allocation5 + $0x114] ss:$8 sps:$4 sm:$0xff]   ;;  %v1469_v3 = vld [vmem:[#allocation5 + $0x110] ss:$8 sps:$4 sm:$0xff]   ;;  %v1470_v4 = vld [vmem:[#allocation5 + $0x124] ss:$8 sps:$4 sm:$0xff]  }
  0x5f   :  { %741 = vmatpush1.bf16.msra.mxu0 %v1466_v1  ;;  %v1472_v5 = vld [vmem:[#allocation5 + $0x120] ss:$8 sps:$4 sm:$0xff]   ;;  %v1473_v6 = vld [vmem:[#allocation5 + $0x134] ss:$8 sps:$4 sm:$0xff]   ;;  %v1475_v7 = vld [vmem:[#allocation5 + $0x130] ss:$8 sps:$4 sm:$0xff]  }
  0x60   :  { %742 = vmatprep.subr.bf16.mxu0 %v1467_v2  ;;  %v1476_v8 = vld [vmem:[#allocation5 + $0x144] ss:$8 sps:$4 sm:$0xff]   ;;  %v1478_v9 = vld [vmem:[#allocation5 + $0x140] ss:$8 sps:$4 sm:$0xff]   ;;  %v1479_v10 = vld [vmem:[#allocation5 + $0x154] ss:$8 sps:$4 sm:$0xff]  }
  0x61   :  { %v1481_v11 = vld [vmem:[#allocation5 + $0x150] ss:$8 sps:$4 sm:$0xff]   ;;  %v1482_v12 = vld [vmem:[#allocation5 + $0x164] ss:$8 sps:$4 sm:$0xff]   ;;  %v1511_v14 = vld [vmem:[#allocation5] ss:$8 sps:$4 sm:$0xff]  }
  0x62   :  { %v1509_v13 = vld [vmem:[#allocation5 + $0x4] ss:$8 sps:$4 sm:$0xff]   ;;  %v1484_v15 = vld [vmem:[#allocation5 + $0x160] ss:$8 sps:$4 sm:$0xff]   ;;  %v1485_v16 = vld [vmem:[#allocation5 + $0x174] ss:$8 sps:$4 sm:$0xff]  }
  0x63   :  { %743 = vmatpush1.bf16.msra.mxu0 %v1469_v3  ;;  %699 = vmatprep.subr.bf16.mxu1 %v1509_v13  ;;  %v1515_v17 = vld [vmem:[#allocation5 + $0x14] ss:$8 sps:$4 sm:$0xff]   ;;  %v1517_v18 = vld [vmem:[#allocation5 + $0x10] ss:$8 sps:$4 sm:$0xff]   ;;  %v94_v19 = vld [vmem:[#allocation2 + $0x18] sm:$0xff]  ;;  %vm1790_vm0 = vmmov 0  }
  0x64   :  { %744 = vmatprep.subr.bf16.mxu0 %v1470_v4  ;;  %700 = vmatpush1.bf16.msra.mxu1 %v1511_v14  ;;  %v1487_v20 = vld [vmem:[#allocation5 + $0x170] ss:$8 sps:$4 sm:$0xff]   ;;  %v100_v21 = vpack.c.bf16 %v94_v19, %v94_v19  ;;  %v1521_v22 = vld [vmem:[#allocation5 + $0x24] ss:$8 sps:$4 sm:$0xff]   ;;  %v1523_v23 = vld [vmem:[#allocation5 + $0x20] ss:$8 sps:$4 sm:$0xff]  }
  0x65   :  { %701 = vmatprep.subr.bf16.mxu1 %v1515_v17  ;;  %v1488_v24 = vld [vmem:[#allocation5 + $0x184] ss:$8 sps:$4 sm:$0xff]   ;;  %v1527_v25 = vld [vmem:[#allocation5 + $0x34] ss:$8 sps:$4 sm:$0xff]   ;;  %v1490_v26 = vld [vmem:[#allocation5 + $0x180] ss:$8 sps:$4 sm:$0xff]  }
  0x66   :  { %772 = vmatprep.mubr.bf16.mxu0 %v100_v21  ;;  %v1529_v27 = vld [vmem:[#allocation5 + $0x30] ss:$8 sps:$4 sm:$0xff]   ;;  %v1491_v28 = vld [vmem:[#allocation5 + $0x194] ss:$8 sps:$4 sm:$0xff]   ;;  %v1533_v29 = vld [vmem:[#allocation5 + $0x44] ss:$8 sps:$4 sm:$0xff]  }
  0x67   :  { %745 = vmatpush1.bf16.msra.mxu0 %v1472_v5  ;;  %v1493_v30 = vld [vmem:[#allocation5 + $0x190] ss:$8 sps:$4 sm:$0xff]   ;;  %v1535_v31 = vld [vmem:[#allocation5 + $0x40] ss:$8 sps:$4 sm:$0xff]   ;;  %v1494_v32 = vld [vmem:[#allocation5 + $0x1a4] ss:$8 sps:$4 sm:$0xff]  }
  0x68   :  { %746 = vmatprep.subr.bf16.mxu0 %v1473_v6  ;;  %702 = vmatpush1.bf16.msra.mxu1 %v1517_v18  ;;  %v1539_v33 = vld [vmem:[#allocation5 + $0x54] ss:$8 sps:$4 sm:$0xff]   ;;  %v1496_v34 = vld [vmem:[#allocation5 + $0x1a0] ss:$8 sps:$4 sm:$0xff]   ;;  %v1541_v35 = vld [vmem:[#allocation5 + $0x50] ss:$8 sps:$4 sm:$0xff]  }
  0x69   :  { %703 = vmatprep.subr.bf16.mxu1 %v1521_v22  ;;  %v1497_v36 = vld [vmem:[#allocation5 + $0x1b4] ss:$8 sps:$4 sm:$0xff]   ;;  %v1545_v37 = vld [vmem:[#allocation5 + $0x64] ss:$8 sps:$4 sm:$0xff]   ;;  %v1499_v38 = vld [vmem:[#allocation5 + $0x1b0] ss:$8 sps:$4 sm:$0xff]  }
  0x6a   :  { %v1547_v39 = vld [vmem:[#allocation5 + $0x60] ss:$8 sps:$4 sm:$0xff]   ;;  %v1500_v40 = vld [vmem:[#allocation5 + $0x1c4] ss:$8 sps:$4 sm:$0xff]   ;;  %v1551_v41 = vld [vmem:[#allocation5 + $0x74] ss:$8 sps:$4 sm:$0xff]  }
  0x6b   :  { %747 = vmatpush1.bf16.msra.mxu0 %v1475_v7  ;;  %v1502_v42 = vld [vmem:[#allocation5 + $0x1c0] ss:$8 sps:$4 sm:$0xff]   ;;  %v1553_v43 = vld [vmem:[#allocation5 + $0x70] ss:$8 sps:$4 sm:$0xff]   ;;  %v1503_v44 = vld [vmem:[#allocation5 + $0x1d4] ss:$8 sps:$4 sm:$0xff]  }
  0x6c   :  { %748 = vmatprep.subr.bf16.mxu0 %v1476_v8  ;;  %704 = vmatpush1.bf16.msra.mxu1 %v1523_v23  ;;  %v1557_v45 = vld [vmem:[#allocation5 + $0x84] ss:$8 sps:$4 sm:$0xff]   ;;  %v1505_v46 = vld [vmem:[#allocation5 + $0x1d0] ss:$8 sps:$4 sm:$0xff]   ;;  %v1559_v47 = vld [vmem:[#allocation5 + $0x80] ss:$8 sps:$4 sm:$0xff]  }
  0x6d   :  { %705 = vmatprep.subr.bf16.mxu1 %v1527_v25  ;;  %v1506_v48 = vld [vmem:[#allocation5 + $0x1e4] ss:$8 sps:$4 sm:$0xff]   ;;  %v1563_v49 = vld [vmem:[#allocation5 + $0x94] ss:$8 sps:$4 sm:$0xff]   ;;  %v1508_v50 = vld [vmem:[#allocation5 + $0x1e0] ss:$8 sps:$4 sm:$0xff]  }
  0x6e   :  { %v1565_v51 = vld [vmem:[#allocation5 + $0x90] ss:$8 sps:$4 sm:$0xff]   ;;  %v1512_v52 = vld [vmem:[#allocation5 + $0x1f4] ss:$8 sps:$4 sm:$0xff]   ;;  %v1569_v53 = vld [vmem:[#allocation5 + $0xa4] ss:$8 sps:$4 sm:$0xff]  }
  0x6f   :  { %749 = vmatpush1.bf16.msra.mxu0 %v1478_v9  ;;  %v1514_v54 = vld [vmem:[#allocation5 + $0x1f0] ss:$8 sps:$4 sm:$0xff]   ;;  %v93_v55 = vld [vmem:[#allocation2 + $0x10] sm:$0xff]  ;;  %v1575_v58 = vld [vmem:[#allocation5 + $0xb4] ss:$8 sps:$4 sm:$0xff]  }
  0x70   :  { %750 = vmatprep.subr.bf16.mxu0 %v1479_v10  ;;  %706 = vmatpush1.bf16.msra.mxu1 %v1529_v27  ;;  %v1571_v56 = vld [vmem:[#allocation5 + $0xa0] ss:$8 sps:$4 sm:$0xff]   ;;  %v1520_v57 = vld [vmem:[#allocation5 + $0x204] ss:$8 sps:$4 sm:$0xff]   ;;  %v99_v60 = vpack.c.bf16 %v93_v55, %v93_v55  ;;  %v1526_v61 = vld [vmem:[#allocation5 + $0x214] ss:$8 sps:$4 sm:$0xff]  }
  0x71   :  { %707 = vmatprep.subr.bf16.mxu1 %v1533_v29  ;;  %v1518_v59 = vld [vmem:[#allocation5 + $0x200] ss:$8 sps:$4 sm:$0xff]   ;;  %v1577_v62 = vld [vmem:[#allocation5 + $0xb0] ss:$8 sps:$4 sm:$0xff]   ;;  %v1581_v0 = vld [vmem:[#allocation5 + $0xc4] ss:$8 sps:$4 sm:$0xff]  }
  0x72   :  { %v92_v63 = vld [vmem:[#allocation2 + $0x8] sm:$0xff]  ;;  %v1532_v4 = vld [vmem:[#allocation5 + $0x224] ss:$8 sps:$4 sm:$0xff]   ;;  %v1583_v6 = vld [vmem:[#allocation5 + $0xc0] ss:$8 sps:$4 sm:$0xff]  }
  0x73   :  { %751 = vmatpush1.bf16.msra.mxu0 %v1481_v11  ;;  %v98_v1 = vpack.c.bf16 %v92_v63, %v92_v63  ;;  %v1524_v2 = vld [vmem:[#allocation5 + $0x210] ss:$8 sps:$4 sm:$0xff]   ;;  %v1587_v7 = vld [vmem:[#allocation5 + $0xd4] ss:$8 sps:$4 sm:$0xff]   ;;  %v1530_v8 = vld [vmem:[#allocation5 + $0x220] ss:$8 sps:$4 sm:$0xff]  }
  0x74   :  { %752 = vmatprep.subr.bf16.mxu0 %v1482_v12  ;;  %708 = vmatpush1.bf16.msra.mxu1 %v1535_v31  ;;  %v96_v3 = vld [vmem:[#allocation2 + $0x28] sm:$0xff]  ;;  %v1593_v11 = vld [vmem:[#allocation5 + $0xe4] ss:$8 sps:$4 sm:$0xff]   ;;  %v1595_v14 = vld [vmem:[#allocation5 + $0xe0] ss:$8 sps:$4 sm:$0xff]  }
  0x75   :  { %709 = vmatprep.subr.bf16.mxu1 %v1539_v33  ;;  %731 = vmatprep.mubr.bf16.mxu1 %v98_v1  ;;  %v102_v5 = vpack.c.bf16 %v96_v3, %v96_v3  ;;  %v1538_v9 = vld [vmem:[#allocation5 + $0x234] ss:$8 sps:$4 sm:$0xff]   ;;  %v1589_v10 = vld [vmem:[#allocation5 + $0xd0] ss:$8 sps:$4 sm:$0xff]   ;;  %v1544_v13 = vld [vmem:[#allocation5 + $0x244] ss:$8 sps:$4 sm:$0xff]   ;;  %v201_v1 = vlaneseq }
  0x76   :  { %v1536_v12 = vld [vmem:[#allocation5 + $0x230] ss:$8 sps:$4 sm:$0xff]   ;;  %v1550_v19 = vld [vmem:[#allocation5 + $0x254] ss:$8 sps:$4 sm:$0xff]   ;;  %v1609_v22 = vld [vmem:[#allocation7] sm:$0xff]  }
  0x77   :  { %753 = vmatpush1.bf16.msra.mxu0 %v1484_v15  ;;  %v1599_v15 = vld [vmem:[#allocation5 + $0xf4] ss:$8 sps:$4 sm:$0xff]   ;;  %v1601_v17 = vld [vmem:[#allocation5 + $0xf0] ss:$8 sps:$4 sm:$0xff]   ;;  %v1556_v23 = vld [vmem:[#allocation5 + $0x264] ss:$8 sps:$4 sm:$0xff]  }
  0x78   :  { %754 = vmatprep.subr.bf16.mxu0 %v1485_v16  ;;  %710 = vmatpush1.bf16.msra.mxu1 %v1541_v35  ;;  %v1542_v16 = vld [vmem:[#allocation5 + $0x240] ss:$8 sps:$4 sm:$0xff]   ;;  %v91_v18 = vld [vmem:[#allocation2] sm:$0xff]  ;;  %v1614_v33 = vld [vmem:[#allocation7 + $0x58] sm:$0xff]  }
  0x79   :  { %711 = vmatprep.subr.bf16.mxu1 %v1545_v37  ;;  %v1548_v21 = vld [vmem:[#allocation5 + $0x250] ss:$8 sps:$4 sm:$0xff]   ;;  %v1610_v25 = vld [vmem:[#allocation7 + $0x48] sm:$0xff]   ;;  %v1616_v37 = vld [vmem:[#allocation7 + $0x60] sm:$0xff]  }
  0x7a   :  { %v1611_v27 = vld [vmem:[#allocation7 + $0x8] sm:$0xff]   ;;  %v1612_v29 = vld [vmem:[#allocation7 + $0x50] sm:$0xff]   ;;  %v1615_v35 = vld [vmem:[#allocation7 + $0x18] sm:$0xff]  }
  0x7b   :  { %755 = vmatpush1.bf16.msra.mxu0 %v1487_v20  ;;  %v1608_v20 = vld [vmem:[#allocation7 + $0x40] sm:$0xff]   ;;  %v1613_v31 = vld [vmem:[#allocation7 + $0x10] sm:$0xff]   ;;  %v1619_v55 = vld [vmem:[#allocation7 + $0x28] sm:$0xff]  }
  0x7c   :  { %756 = vmatprep.subr.bf16.mxu0 %v1488_v24  ;;  %712 = vmatpush1.bf16.msra.mxu1 %v1547_v39  ;;  %v97_v24 = vpack.c.bf16 %v91_v18, %v91_v18  ;;  %v1617_v39 = vld [vmem:[#allocation7 + $0x20] sm:$0xff]  }
  0x7d   :  { %713 = vmatprep.subr.bf16.mxu1 %v1551_v41  ;;  %v1578_v41 = vld [vmem:[#allocation5 + $0x2a0] ss:$8 sps:$4 sm:$0xff]  }
  0x7f   :  { %757 = vmatpush1.bf16.msra.mxu0 %v1490_v26  ;;  %v1554_v26 = vld [vmem:[#allocation5 + $0x260] ss:$8 sps:$4 sm:$0xff]  }
  0x80   :  { %758 = vmatprep.subr.bf16.mxu0 %v1491_v28  ;;  %714 = vmatpush1.bf16.msra.mxu1 %v1553_v43  ;;  %v1562_v28 = vld [vmem:[#allocation5 + $0x274] ss:$8 sps:$4 sm:$0xff]   ;;  %v1584_v43 = vld [vmem:[#allocation5 + $0x2b0] ss:$8 sps:$4 sm:$0xff]  }
  0x81   :  { %715 = vmatprep.subr.bf16.mxu1 %v1557_v45  ;;  %v1590_v45 = vld [vmem:[#allocation5 + $0x2c0] ss:$8 sps:$4 sm:$0xff]  }
  0x83   :  { %759 = vmatpush1.bf16.msra.mxu0 %v1493_v30  ;;  %v1560_v30 = vld [vmem:[#allocation5 + $0x270] ss:$8 sps:$4 sm:$0xff]  }
  0x84   :  { %760 = vmatprep.subr.bf16.mxu0 %v1494_v32  ;;  %716 = vmatpush1.bf16.msra.mxu1 %v1559_v47  ;;  %v1568_v32 = vld [vmem:[#allocation5 + $0x284] ss:$8 sps:$4 sm:$0xff]   ;;  %v1596_v47 = vld [vmem:[#allocation5 + $0x2d0] ss:$8 sps:$4 sm:$0xff]  }
  0x85   :  { %717 = vmatprep.subr.bf16.mxu1 %v1563_v49  ;;  %v1602_v49 = vld [vmem:[#allocation5 + $0x2e0] ss:$8 sps:$4 sm:$0xff]  }
  0x87   :  { %761 = vmatpush1.bf16.msra.mxu0 %v1496_v34  ;;  %v1566_v34 = vld [vmem:[#allocation5 + $0x280] ss:$8 sps:$4 sm:$0xff]  }
  0x88   :  { %762 = vmatprep.subr.bf16.mxu0 %v1497_v36  ;;  %718 = vmatpush1.bf16.msra.mxu1 %v1565_v51  ;;  %v1574_v36 = vld [vmem:[#allocation5 + $0x294] ss:$8 sps:$4 sm:$0xff]   ;;  %v1605_v51 = vld [vmem:[#allocation5 + $0x2f0] ss:$8 sps:$4 sm:$0xff]  }
  0x89   :  { %719 = vmatprep.subr.bf16.mxu1 %v1569_v53 }
  0x8b   :  { %763 = vmatpush1.bf16.msra.mxu0 %v1499_v38  ;;  %v1572_v38 = vld [vmem:[#allocation5 + $0x290] ss:$8 sps:$4 sm:$0xff]  }
  0x8c   :  { %764 = vmatprep.subr.bf16.mxu0 %v1500_v40  ;;  %720 = vmatpush1.bf16.msra.mxu1 %v1571_v56  ;;  %v1580_v40 = vld [vmem:[#allocation5 + $0x2a4] ss:$8 sps:$4 sm:$0xff]   ;;  %v1620_v56 = vld [vmem:[#allocation7 + $0x70] sm:$0xff]  }
  0x8d   :  { %721 = vmatprep.subr.bf16.mxu1 %v1575_v58  ;;  %v1622_v58 = vld [vmem:[#allocation7 + $0x78] sm:$0xff]  }
  0x8f   :  { %765 = vmatpush1.bf16.msra.mxu0 %v1502_v42  ;;  %v1586_v42 = vld [vmem:[#allocation5 + $0x2b4] ss:$8 sps:$4 sm:$0xff]  }
  0x90   :  { %766 = vmatprep.subr.bf16.mxu0 %v1503_v44  ;;  %722 = vmatpush1.bf16.msra.mxu1 %v1577_v62  ;;  %v1592_v44 = vld [vmem:[#allocation5 + $0x2c4] ss:$8 sps:$4 sm:$0xff]  }
  0x91   :  { %723 = vmatprep.subr.bf16.mxu1 %v1581_v0 }
  0x93   :  { %767 = vmatpush1.bf16.msra.mxu0 %v1505_v46  ;;  %v1598_v46 = vld [vmem:[#allocation5 + $0x2d4] ss:$8 sps:$4 sm:$0xff]  }
  0x94   :  { %768 = vmatprep.subr.bf16.mxu0 %v1506_v48  ;;  %724 = vmatpush1.bf16.msra.mxu1 %v1583_v6  ;;  %v1604_v48 = vld [vmem:[#allocation5 + $0x2e4] ss:$8 sps:$4 sm:$0xff]  }
  0x95   :  { %725 = vmatprep.subr.bf16.mxu1 %v1587_v7 }
  0x97   :  { %769 = vmatpush1.bf16.msra.mxu0 %v1508_v50  ;;  %v1607_v50 = vld [vmem:[#allocation5 + $0x2f4] ss:$8 sps:$4 sm:$0xff]  }
  0x98   :  { %770 = vmatprep.subr.bf16.mxu0 %v1512_v52  ;;  %726 = vmatpush1.bf16.msra.mxu1 %v1589_v10  ;;  %v95_v52 = vld [vmem:[#allocation2 + $0x20] sm:$0xff] }
  0x99   :  { %727 = vmatprep.subr.bf16.mxu1 %v1593_v11  ;;  %v101_v53 = vpack.c.bf16 %v95_v52, %v95_v52 }
  0x9b   :  { %771 = vmatpush1.bf16.msra.mxu0 %v1514_v54  ;;  %v1618_v54 = vld [vmem:[#allocation7 + $0x68] sm:$0xff]  }
  0x9c   :  { %781 = vmatprep.subr.bf16.mxu0 %v1520_v57  ;;  %728 = vmatpush1.bf16.msra.mxu1 %v1595_v14  ;;  %v1621_v57 = vld [vmem:[#allocation7 + $0x30] sm:$0xff]  }
  0x9d   :  { %729 = vmatprep.subr.bf16.mxu1 %v1599_v15 }
  0x9e   :  { %773 = vmatmul.mubr.bf16.vlgmr.msra.gmra.mrb[0].mxu0 %v99_v60  ;;  %v1789_v60 = vmov 0.0  }
  0x9f   :  { %782 = vmatpush1.bf16.msra.mxu0 %v1518_v59  ;;  %813 = vmatprep.mubr.bf16.mxu0 %v102_v5  ;;  %v1623_v59 = vld [vmem:[#allocation7 + $0x38] sm:$0xff]  }
  0xa0   :  { %783 = vmatprep.subr.bf16.mxu0 %v1526_v61  ;;  %730 = vmatpush1.bf16.msra.mxu1 %v1601_v17 }
  0xa1   :  { %1364 = vmatprep.subr.bf16.mxu1 %v1608_v20 }
  0xa3   :  { %784 = vmatpush1.bf16.msra.mxu0 %v1524_v2  ;;  %732 = vmatmul.mubr.bf16.vlgmr.msra.gmra.mrb[0].mxu1 %v97_v24  ;;  %v1900_v2 = vshrl.u32 %v201_v1, 7  ;;  %v1626_v24 = vld [vmem:[#allocation8 + $0x10] sm:$0xff]  }
  0xa4   :  { %785 = vmatprep.subr.bf16.mxu0 %v1532_v4  ;;  %1365 = vmatpush3.bf16.msra.mxu1 %v1609_v22  ;;  %v1906_v4 = vld [vmem:[%s1953_s5] sm:$0xff]  ;;  %s1791_s5 = smov [#allocation11]  }
  0xa5   :  { %1366 = vmatprep.subr.bf16.mxu1 %v1610_v25  ;;  %v203_v3 = vsub.s32 0, %v1900_v2  ;;  %v207_v5 = vsub.s32 4, %v1900_v2  ;;  %v1627_v25 = vld [vmem:[#allocation8 + $0x18] sm:$0xff]   ;;  %s1225_s26 = sshll.u32 %s1791_s5, 4  ;;  %s1226_s26 = int_to_ptr.vmem [resolvable:$true] %s1225_s26 }
  0xa6   :  { %s1750_s3 = scalar_lea.vmem %s1226_s26, 128  ;;  %p1755_p1 = scmp.lt.s32.totalorder %s1226_s26, %s1226_s26 }
  0xa7   :  { %786 = vmatpush1.bf16.msra.mxu0 %v1530_v8  ;;  %v204_v6 = vrot.slane %v1906_v4, %v203_v3  ;;  %v208_v7 = vrot.slane %v1906_v4, %v207_v5  ;;  %p1751_p0 = scmp.ne.s32.totalorder %s1226_s26, %s1750_s3  ;;  %p1756_p2 = scmp.lt.s32.totalorder %s1750_s3, %s1750_s3 }
  0xa8   :  { %787 = vmatprep.subr.bf16.mxu0 %v1538_v9  ;;  %1367 = vmatpush3.bf16.msra.mxu1 %v1611_v27  ;;  %v1629_v27 = vld [vmem:[#allocation8 + $0x28] sm:$0xff]  }
  0xa9   :  { %1368 = vmatprep.subr.bf16.mxu1 %v1612_v29  ;;  %v214_v8 = vrot.slane %v204_v6, %v203_v3  ;;  %v218_v9 = vrot.slane %v208_v7, %v203_v3  ;;  %v1631_v29 = vld [vmem:[#allocation8 + $0x38] sm:$0xff]   ;;  %p1757_p3 = por %p1756_p2, %p1755_p1 }
  0xab   :  { %788 = vmatpush1.bf16.msra.mxu0 %v1536_v12  ;;  %p1758_p4 = pnand %p1757_p3, %p1751_p0 }
  0xac   :  { %789 = vmatprep.subr.bf16.mxu0 %v1544_v13  ;;  %1369 = vmatpush3.bf16.msra.mxu1 %v1613_v31 }
  0xad   :  { %1370 = vmatprep.subr.bf16.mxu1 %v1614_v33 }
  0xaf   :  { %790 = vmatpush1.bf16.msra.mxu0 %v1542_v16 }
  0xb0   :  { %791 = vmatprep.subr.bf16.mxu0 %v1550_v19  ;;  %1371 = vmatpush3.bf16.msra.mxu1 %v1615_v35 }
  0xb1   :  { %1372 = vmatprep.subr.bf16.mxu1 %v1616_v37 }
  0xb3   :  { %792 = vmatpush1.bf16.msra.mxu0 %v1548_v21  ;;  %v1624_v21 = vld [vmem:[#allocation8] sm:$0xff]  }
  0xb4   :  { %793 = vmatprep.subr.bf16.mxu0 %v1556_v23  ;;  %1373 = vmatpush3.bf16.msra.mxu1 %v1617_v39  ;;  %v1625_v23 = vld [vmem:[#allocation8 + $0x8] sm:$0xff]   ;;  %v1632_v39 = vld [vmem:[#allocation10] sm:$0xff]  }
  0xb5   :  { %1374 = vmatprep.subr.bf16.mxu1 %v1618_v54 }
  0xb7   :  { %794 = vmatpush1.bf16.msra.mxu0 %v1554_v26  ;;  %v1628_v26 = vld [vmem:[#allocation8 + $0x20] sm:$0xff]  }
  0xb8   :  { %795 = vmatprep.subr.bf16.mxu0 %v1562_v28  ;;  %1375 = vmatpush3.bf16.msra.mxu1 %v1619_v55  ;;  %v1630_v28 = vld [vmem:[#allocation8 + $0x30] sm:$0xff]  }
  0xb9   :  { %1376 = vmatprep.subr.bf16.mxu1 %v1620_v56 }
  0xbb   :  { %796 = vmatpush1.bf16.msra.mxu0 %v1560_v30  ;;  %v860_v30 = vsub.s32 1, %v1900_v2 }
  0xbc   :  { %797 = vmatprep.subr.bf16.mxu0 %v1568_v32  ;;  %1377 = vmatpush3.bf16.msra.mxu1 %v1621_v57  ;;  %v1128_v57 = vsub.s32 3, %v1900_v2 }
  0xbd   :  { %1378 = vmatprep.subr.bf16.mxu1 %v1622_v58  ;;  %v861_v32 = vrot.slane %v1906_v4, %v860_v30 }
  0xbe   :  { %v1129_v58 = vrot.slane %v1906_v4, %v1128_v57 }
  0xbf   :  { %798 = vmatpush1.bf16.msra.mxu0 %v1566_v34 }
  0xc0   :  { %799 = vmatprep.subr.bf16.mxu0 %v1574_v36  ;;  %1379 = vmatpush3.bf16.msra.mxu1 %v1623_v59 }
  0xc1   :  { %1404 = vmatprep.subr.bf16.mxu1 %v1789_v60 }
  0xc3   :  { %800 = vmatpush1.bf16.msra.mxu0 %v1572_v38 }
  0xc4   :  { %801 = vmatprep.subr.bf16.mxu0 %v1580_v40 }
  0xc7   :  { %802 = vmatpush1.bf16.msra.mxu0 %v1578_v41  ;;  %v1633_v41 = vld [vmem:[#allocation10 + $0x8] sm:$0xff]  }
  0xc8   :  { %803 = vmatprep.subr.bf16.mxu0 %v1586_v42  ;;  %v1634_v42 = vld [vmem:[#allocation10 + $0x10] sm:$0xff]  }
  0xcb   :  { %804 = vmatpush1.bf16.msra.mxu0 %v1584_v43  ;;  %v1635_v43 = vld [vmem:[#allocation10 + $0x18] sm:$0xff]  }
  0xcc   :  { %805 = vmatprep.subr.bf16.mxu0 %v1592_v44  ;;  %v1636_v44 = vld [vmem:[#allocation10 + $0x20] sm:$0xff]  }
  0xcf   :  { %806 = vmatpush1.bf16.msra.mxu0 %v1590_v45  ;;  %v1637_v45 = vld [vmem:[#allocation10 + $0x28] sm:$0xff]  }
  0xd0   :  { %807 = vmatprep.subr.bf16.mxu0 %v1598_v46  ;;  %v1638_v46 = vld [vmem:[#allocation10 + $0x30] sm:$0xff]  }
  0xd3   :  { %808 = vmatpush1.bf16.msra.mxu0 %v1596_v47  ;;  %v1639_v47 = vld [vmem:[#allocation10 + $0x38] sm:$0xff]  }
  0xd4   :  { %809 = vmatprep.subr.bf16.mxu0 %v1604_v48  ;;  %v1018_v48 = vsub.s32 2, %v1900_v2 }
  0xd7   :  { %810 = vmatpush1.bf16.msra.mxu0 %v1602_v49  ;;  %v1019_v49 = vrot.slane %v1906_v4, %v1018_v48 }
  0xd8   :  { %811 = vmatprep.subr.bf16.mxu0 %v1607_v50 }
  0xdb   :  { %812 = vmatpush1.bf16.msra.mxu0 %v1605_v51 }
  0xde   :  { %814 = vmatmul.mubr.bf16.vlgmr.msra.gmra.mrb[0].mxu0 %v101_v53 }
 0x176   :  { %v733_v61 = vpop.f32.mrb[0].mxu1 }
 0x177   :  { %v735_v62 = vpop.f32.mrb[1].mxu1  ;;  %v734_v10 = vadd.f32 %v733_v61, %v214_v8 }
 0x178   :  { %v737_v63 = vpop.f32.mrb[2].mxu1  ;;  %v736_v11 = vadd.f32 %v735_v62, %v218_v9 }
 0x179   :  { %v738_v0 = vpop.f32.mrb[3].mxu1 }
 0x1b1   :  { %v815_v12 = vpop.f32.mrb[0].mxu0 }
 0x1b2   :  { %v1445_v13 = vadd.f32 %v815_v12, %v734_v10  ;;  %v817_v14 = vpop.f32.mrb[1].mxu0 }
 0x1b3   :  { %v1447_v15 = vadd.f32 %v817_v14, %v736_v11  ;;  %v819_v16 = vpop.f32.mrb[2].mxu0 }
 0x1b4   :  { %v822_v17 = vmax.f32 %v1445_v13, 0.0  ;;  %v820_v18 = vpop.f32.mrb[3].mxu0 }
 0x1b5   :  { %v823_v19 = vmax.f32 %v1447_v15, 0.0 }
 0x1b6   :  { %v824_v22 = vpack.c.bf16 %v822_v17, %v822_v17 }
 0x1b7   :  { %v825_v20 = vpack.c.bf16 %v823_v19, %v823_v19 }
 0x1b9   :  { %990 = vmatprep.mubr.bf16.mxu1 %v825_v20 }
 0x1ba   :  { %991 = vmatmul.mubr.bf16.vlgmr.msra.gmra.mrb[4].mxu1 %v824_v22 }
 0x1bb   :  { %1405 = vmatpush3.bf16.msra.mxu1 %v1624_v21  ;;  %1420 = vmatprep.mubr.msk.bf16.mxu1 %vm1790_vm0, %v1789_v60 }
 0x1bc   :  { %1406 = vmatprep.subr.bf16.mxu1 %v1789_v60 }
 0x1bf   :  { %1407 = vmatpush3.bf16.msra.mxu1 %v1625_v23 }
 0x1c0   :  { %1408 = vmatprep.subr.bf16.mxu1 %v1789_v60 }
 0x1c3   :  { %1409 = vmatpush3.bf16.msra.mxu1 %v1626_v24 }
 0x1c4   :  { %1410 = vmatprep.subr.bf16.mxu1 %v1789_v60 }
 0x1c7   :  { %1411 = vmatpush3.bf16.msra.mxu1 %v1627_v25 }
 0x1c8   :  { %1412 = vmatprep.subr.bf16.mxu1 %v1789_v60 }
 0x1cb   :  { %1413 = vmatpush3.bf16.msra.mxu1 %v1628_v26 }
 0x1cc   :  { %1414 = vmatprep.subr.bf16.mxu1 %v1789_v60 }
 0x1cf   :  { %1415 = vmatpush3.bf16.msra.mxu1 %v1629_v27 }
 0x1d0   :  { %1416 = vmatprep.subr.bf16.mxu1 %v1789_v60 }
 0x1d3   :  { %1417 = vmatpush3.bf16.msra.mxu1 %v1630_v28 }
 0x1d4   :  { %1418 = vmatprep.subr.bf16.mxu1 %v1789_v60 }
 0x1d7   :  { %1419 = vmatpush3.bf16.msra.mxu1 %v1631_v29 }
 0x1d8   :  { %1424 = vmatprep.subr.bf16.mxu1 %v1789_v60 }
 0x28d   :  { %v1380_v31 = vpop.f32.mrb[4].mxu1 }
 0x28e   :  { %v1381_v33 = vpop.f32.mrb[5].mxu1 }
 0x28f   :  { %v1382_v34 = vadd.f32 %v1381_v33, %v1380_v31  ;;  %v1383_v35 = vpop.f32.mrb[6].mxu1 }
 0x290   :  { %v1384_v36 = vpop.f32.mrb[7].mxu1 }
 0x291   :  { %v993_v37 = vadd.f32 %v1382_v34, %v861_v32 }
 0x293   :  { %v998_v38 = vmax.f32 %v993_v37, 0.0 }
 0x295   :  { %v999_v40 = vpack.c.bf16 %v998_v38, %v998_v38 }
 0x297   :  { %1421 = vmatmul.mubr.bf16.vlgmr.msra.gmra.mrb[8].mxu1 %v999_v40 }
 0x298   :  { %1425 = vmatpush3.bf16.msra.mxu1 %v1632_v39  ;;  %1440 = vmatprep.mubr.msk.bf16.mxu1 %vm1790_vm0, %v1789_v60 }
 0x299   :  { %1426 = vmatprep.subr.bf16.mxu1 %v1789_v60 }
 0x29c   :  { %1427 = vmatpush3.bf16.msra.mxu1 %v1633_v41 }
 0x29d   :  { %1428 = vmatprep.subr.bf16.mxu1 %v1789_v60 }
 0x2a0   :  { %1429 = vmatpush3.bf16.msra.mxu1 %v1634_v42 }
 0x2a1   :  { %1430 = vmatprep.subr.bf16.mxu1 %v1789_v60 }
 0x2a4   :  { %1431 = vmatpush3.bf16.msra.mxu1 %v1635_v43 }
 0x2a5   :  { %1432 = vmatprep.subr.bf16.mxu1 %v1789_v60 }
 0x2a8   :  { %1433 = vmatpush3.bf16.msra.mxu1 %v1636_v44 }
 0x2a9   :  { %1434 = vmatprep.subr.bf16.mxu1 %v1789_v60 }
 0x2ac   :  { %1435 = vmatpush3.bf16.msra.mxu1 %v1637_v45 }
 0x2ad   :  { %1436 = vmatprep.subr.bf16.mxu1 %v1789_v60 }
 0x2b0   :  { %1437 = vmatpush3.bf16.msra.mxu1 %v1638_v46 }
 0x2b1   :  { %1438 = vmatprep.subr.bf16.mxu1 %v1789_v60 }
 0x2b4   :  { %1439 = vmatpush3.bf16.msra.mxu1 %v1639_v47 }
 0x36a   :  { %v1102_v50 = vpop.f32.mrb[8].mxu1 }
 0x36b   :  { %v1103_v51 = vadd.f32 %v1102_v50, %v1019_v49  ;;  %v1422_v52 = vpop.f32.mrb[9].mxu1 }
 0x36c   :  { %v1105_v53 = vpop.f32.mrb[10].mxu1 }
 0x36d   :  { %v1108_v54 = vmax.f32 %v1103_v51, 0.0  ;;  %v1423_v55 = vpop.f32.mrb[11].mxu1 }
 0x36f   :  { %v1109_v56 = vpack.c.bf16 %v1108_v54, %v1108_v54 }
 0x371   :  { %1441 = vmatmul.mubr.bf16.vlgmr.msra.gmra.mrb[12].mxu1 %v1109_v56 }
 0x444   :  { %v1212_v59 = vpop.f32.mrb[12].mxu1 }
 0x445   :  { %v1213_v60 = vadd.f32 %v1212_v59, %v1129_v58  ;;  %v1442_v61 = vpop.f32.mrb[13].mxu1 }
 0x446   :  { %v1215_v62 = vpop.f32.mrb[14].mxu1 }
 0x447   :  { %1218 = vst [vmem:[#allocation11] sm:$0xff] %v1213_v60  ;;  %v1443_v63 = vpop.f32.mrb[15].mxu1 }
 0x448   :  { %1761 = shalt.err (!%p1758_p4)
}
 0x449   :  { %s1762_s15 = scalar_lea.hbm %s1954_s6, 128 }
 0x44a   :  { %p1763_p5 = scmp.ne.s32.totalorder %s1954_s6, %s1762_s15  ;;  %p1766_p6 = scmp.lt.u32.totalorder %s1762_s15, %s1954_s6 }
 0x44c   :  { %p1768_p7 = pnand %p1766_p6, %p1763_p5 }
 0x44e   :  { %1771 = shalt.err (!%p1768_p7)
}
 0x44f   :  { %1228 = dma.vmem_to_hbm [thread:$0]  %s1226_s26, 128, %s1954_s6, [#allocation4]  }
 0x450   :  { %1778 = dma.done.wait [#allocation4], 128  }
 0x451   :  { %1779 = vsyncadd [#allocation4], 4294967168 }
 0x452   :  { %1232 = vsyncpa [#allocation3], 1 }
 0x453   :  { %1233 = vsyncpa [#allocation6], 1 }
 0x454   :  { %1234 = vsyncpa [#allocation9], 1 }
 0x455   :  { %1235 = vsyncpa [#allocation4], 1 }

// kernel: tpu_custom_call.1
= control target key start
LH: loop header
LB: loop body
LE: loop exit
PB: predicated region body
PF: predicated region fallthrough
CT: control target
= control target key end

     0   :  { %11 = vsyncpa [#allocation3], 0  ;;  %s1948_s0 = inlined_call_operand.hbm [shape: f32[8,768], index: 0, kind: input, shape index: {}]   ;;  %s1949_s1 = inlined_call_operand.hbm [shape: bf16[1024,256], index: 1, kind: input, shape index: {}]   ;;  %s1950_s2 = inlined_call_operand.hbm [shape: bf16[256,128], index: 2, kind: input, shape index: {}]   ;;  %s1951_s3 = inlined_call_operand.hbm [shape: bf16[128,128], index: 3, kind: input, shape index: {}]   ;;  %s1952_s4 = inlined_call_operand.hbm [shape: bf16[128,128], index: 4, kind: input, shape index: {}]   ;;  %s1953_s5 = inlined_call_operand.vmem [shape: f32[4,256], index: 5, kind: input, shape index: {}]   ;;  %s1954_s6 = inlined_call_operand.hbm [shape: f32[8,128], index: 6, kind: output, shape index: {}]  }
   0x1   :  { %12 = vsyncpa [#allocation6], 0 }
   0x2   :  { %13 = vsyncpa [#allocation9], 0 }
   0x3   :  { %14 = vsyncpa [#allocation4], 0  ;;  %s1780_s21 = smov [#allocation5]   ;;  %s1640_s25 = scalar_lea.hbm %s1949_s1, 12288 }
   0x4   :  { %s30_s22 = sshll.u32 %s1780_s21, 4  ;;  %p1641_p0 = scmp.ne.s32.totalorder %s1949_s1, %s1640_s25  ;;  %s31_s22 = int_to_ptr.vmem [resolvable:$true] %s30_s22 }
   0x5   :  { %s1642_s30 = scalar_lea.hbm %s1949_s1, 16384  ;;  %p1644_p2 = scmp.lt.u32.totalorder %s1640_s25, %s1949_s1 }
   0x6   :  { %p1643_p1 = scmp.lt.u32.totalorder %s1642_s30, %s1640_s25 }
   0x8   :  { %p1645_p3 = por %p1644_p2, %p1643_p1 }
   0xa   :  { %p1646_p4 = pnand %p1645_p3, %p1641_p0 }
   0xc   :  { %1649 = shalt.err (!%p1646_p4)
}
   0xd   :  { %s1650_s9 = scalar_lea.vmem %s31_s22, 12288  ;;  %p1655_p6 = scmp.lt.s32.totalorder %s31_s22, %s31_s22 }
   0xe   :  { %p1651_p5 = scmp.ne.s32.totalorder %s31_s22, %s1650_s9  ;;  %p1656_p7 = scmp.lt.s32.totalorder %s1650_s9, %s1650_s9 }
  0x10   :  { %p1657_p8 = por %p1656_p7, %p1655_p6 }
  0x12   :  { %p1658_p9 = pnand %p1657_p8, %p1651_p5 }
  0x14   :  { %1661 = shalt.err (!%p1658_p9)
}
  0x15   :  { %s1781_s10 = smov 128   ;;  %s1782_s11 = smov 8  }
  0x16   :  { %36 = dma.hbm_to_vmem [thread:$0]  %s1949_s1, 12288, %s31_s22, [#allocation6], %s1781_s10, %s1781_s10, %s1782_s11  }
  0x17   :  { %s1783_s14 = smov [#allocation8]   ;;  %s1784_s16 = smov [#allocation2]  }
  0x18   :  { %s54_s15 = sshll.u32 %s1783_s14, 4  ;;  %s21_s17 = sshll.u32 %s1784_s16, 4  ;;  %s55_s15 = int_to_ptr.vmem [resolvable:$true] %s54_s15  ;;  %s22_s17 = int_to_ptr.vmem [resolvable:$true] %s21_s17 }
  0x19   :  { %s1662_s20 = scalar_lea.hbm %s1951_s3, 1024 }
  0x1a   :  { %p1663_p10 = scmp.ne.s32.totalorder %s1951_s3, %s1662_s20  ;;  %p1666_p11 = scmp.lt.u32.totalorder %s1662_s20, %s1951_s3 }
  0x1c   :  { %p1668_p12 = pnand %p1666_p11, %p1663_p10 }
  0x1e   :  { %1671 = shalt.err (!%p1668_p12)
}
  0x1f   :  { %s1672_s1 = scalar_lea.vmem %s55_s15, 1024  ;;  %p1677_p0 = scmp.lt.s32.totalorder %s55_s15, %s55_s15 }
  0x20   :  { %p1673_p13 = scmp.ne.s32.totalorder %s55_s15, %s1672_s1  ;;  %p1678_p1 = scmp.lt.s32.totalorder %s1672_s1, %s1672_s1 }
  0x22   :  { %p1679_p2 = por %p1678_p1, %p1677_p0 }
  0x24   :  { %p1680_p3 = pnand %p1679_p2, %p1673_p13 }
  0x26   :  { %1683 = shalt.err (!%p1680_p3)
}
  0x27   :  { %s1785_s22 = smov 64   ;;  %s1786_s26 = smov 4  }
  0x28   :  { %60 = dma.hbm_to_vmem [thread:$0]  %s1951_s3, 1024, %s55_s15, [#allocation9], %s1785_s22, %s1785_s22, %s1786_s26  }
  0x29   :  { %s1684_s7 = scalar_lea.hbm %s1948_s0, 768 }
  0x2a   :  { %p1685_p4 = scmp.ne.s32.totalorder %s1948_s0, %s1684_s7  ;;  %p1688_p5 = scmp.lt.u32.totalorder %s1684_s7, %s1948_s0 }
  0x2c   :  { %p1690_p6 = pnand %p1688_p5, %p1685_p4 }
  0x2e   :  { %1693 = shalt.err (!%p1690_p6)
}
  0x2f   :  { %s1694_s12 = scalar_lea.vmem %s22_s17, 768  ;;  %p1699_p8 = scmp.lt.s32.totalorder %s22_s17, %s22_s17 }
  0x30   :  { %p1695_p7 = scmp.ne.s32.totalorder %s22_s17, %s1694_s12  ;;  %p1700_p9 = scmp.lt.s32.totalorder %s1694_s12, %s1694_s12 }
  0x32   :  { %p1701_p10 = por %p1700_p9, %p1699_p8 }
  0x34   :  { %p1702_p11 = pnand %p1701_p10, %p1695_p7 }
  0x36   :  { %1705 = shalt.err (!%p1702_p11)
}
  0x37   :  { %24 = dma.hbm_to_vmem [thread:$0]  %s1948_s0, 768, %s22_s17, [#allocation3]  }
  0x38   :  { %s1787_s14 = smov [#allocation7]   ;;  %s1788_s16 = smov [#allocation10]  }
  0x39   :  { %s42_s15 = sshll.u32 %s1787_s14, 4  ;;  %s66_s18 = sshll.u32 %s1788_s16, 4  ;;  %s43_s15 = int_to_ptr.vmem [resolvable:$true] %s42_s15  ;;  %s67_s18 = int_to_ptr.vmem [resolvable:$true] %s66_s18 }
  0x3a   :  { %s1706_s21 = scalar_lea.hbm %s1950_s2, 2048 }
  0x3b   :  { %p1707_p12 = scmp.ne.s32.totalorder %s1950_s2, %s1706_s21  ;;  %p1710_p13 = scmp.lt.u32.totalorder %s1706_s21, %s1950_s2 }
  0x3d   :  { %p1712_p0 = pnand %p1710_p13, %p1707_p12 }
  0x3f   :  { %1715 = shalt.err (!%p1712_p0)
}
  0x40   :  { %s1716_s0 = scalar_lea.vmem %s43_s15, 2048  ;;  %p1721_p2 = scmp.lt.s32.totalorder %s43_s15, %s43_s15 }
  0x41   :  { %p1717_p1 = scmp.ne.s32.totalorder %s43_s15, %s1716_s0  ;;  %p1722_p3 = scmp.lt.s32.totalorder %s1716_s0, %s1716_s0 }
  0x43   :  { %p1723_p4 = por %p1722_p3, %p1721_p2 }
  0x45   :  { %p1724_p5 = pnand %p1723_p4, %p1717_p1 }
  0x47   :  { %1727 = shalt.err (!%p1724_p5)
}
  0x48   :  { %48 = dma.hbm_to_vmem [thread:$0]  %s1950_s2, 2048, %s43_s15, [#allocation6], %s1785_s22, %s1785_s22, %s1786_s26  }
  0x49   :  { %s1728_s30 = scalar_lea.hbm %s1952_s4, 1024 }
  0x4a   :  { %p1729_p6 = scmp.ne.s32.totalorder %s1952_s4, %s1728_s30  ;;  %p1732_p7 = scmp.lt.u32.totalorder %s1728_s30, %s1952_s4 }
  0x4c   :  { %p1734_p8 = pnand %p1732_p7, %p1729_p6 }
  0x4e   :  { %1737 = shalt.err (!%p1734_p8)
}
  0x4f   :  { %s1738_s11 = scalar_lea.vmem %s67_s18, 1024  ;;  %p1743_p10 = scmp.lt.s32.totalorder %s67_s18, %s67_s18 }
  0x50   :  { %p1739_p9 = scmp.ne.s32.totalorder %s67_s18, %s1738_s11  ;;  %p1744_p11 = scmp.lt.s32.totalorder %s1738_s11, %s1738_s11 }
  0x52   :  { %p1745_p12 = por %p1744_p11, %p1743_p10 }
  0x54   :  { %p1746_p13 = pnand %p1745_p12, %p1739_p9 }
  0x56   :  { %1749 = shalt.err (!%p1746_p13)
}
  0x57   :  { %72 = dma.hbm_to_vmem [thread:$0]  %s1952_s4, 1024, %s67_s18, [#allocation9], %s1785_s22, %s1785_s22, %s1786_s26  }
  0x58   :  { %1772 = dma.done.wait [#allocation3], 768  }
  0x59   :  { %1773 = vsyncadd [#allocation3], 4294966528 }
  0x5a   :  { %1774 = dma.done.wait [#allocation6], 14336  }
  0x5b   :  { %1775 = vsyncadd [#allocation6], 4294952960 }
  0x5c   :  { %1776 = dma.done.wait [#allocation9], 2048  }
  0x5d   :  { %1777 = vsyncadd [#allocation9], 4294965248  ;;  %v1464_v0 = vld [vmem:[#allocation5 + $0x104] ss:$8 sps:$4 sm:$0xff]   ;;  %v1466_v1 = vld [vmem:[#allocation5 + $0x100] ss:$8 sps:$4 sm:$0xff]  }
  0x5e   :  { %740 = vmatprep.subr.bf16.mxu0 %v1464_v0  ;;  %v1467_v2 = vld [vmem:[#allocation5 + $0x114] ss:$8 sps:$4 sm:$0xff]   ;;  %v1469_v3 = vld [vmem:[#allocation5 + $0x110] ss:$8 sps:$4 sm:$0xff]   ;;  %v1470_v4 = vld [vmem:[#allocation5 + $0x124] ss:$8 sps:$4 sm:$0xff]  }
  0x5f   :  { %741 = vmatpush1.bf16.msra.mxu0 %v1466_v1  ;;  %v1472_v5 = vld [vmem:[#allocation5 + $0x120] ss:$8 sps:$4 sm:$0xff]   ;;  %v1473_v6 = vld [vmem:[#allocation5 + $0x134] ss:$8 sps:$4 sm:$0xff]   ;;  %v1475_v7 = vld [vmem:[#allocation5 + $0x130] ss:$8 sps:$4 sm:$0xff]  }
  0x60   :  { %742 = vmatprep.subr.bf16.mxu0 %v1467_v2  ;;  %v1476_v8 = vld [vmem:[#allocation5 + $0x144] ss:$8 sps:$4 sm:$0xff]   ;;  %v1478_v9 = vld [vmem:[#allocation5 + $0x140] ss:$8 sps:$4 sm:$0xff]   ;;  %v1479_v10 = vld [vmem:[#allocation5 + $0x154] ss:$8 sps:$4 sm:$0xff]  }
  0x61   :  { %v1481_v11 = vld [vmem:[#allocation5 + $0x150] ss:$8 sps:$4 sm:$0xff]   ;;  %v1482_v12 = vld [vmem:[#allocation5 + $0x164] ss:$8 sps:$4 sm:$0xff]   ;;  %v1511_v14 = vld [vmem:[#allocation5] ss:$8 sps:$4 sm:$0xff]  }
  0x62   :  { %v1509_v13 = vld [vmem:[#allocation5 + $0x4] ss:$8 sps:$4 sm:$0xff]   ;;  %v1484_v15 = vld [vmem:[#allocation5 + $0x160] ss:$8 sps:$4 sm:$0xff]   ;;  %v1485_v16 = vld [vmem:[#allocation5 + $0x174] ss:$8 sps:$4 sm:$0xff]  }
  0x63   :  { %743 = vmatpush1.bf16.msra.mxu0 %v1469_v3  ;;  %699 = vmatprep.subr.bf16.mxu1 %v1509_v13  ;;  %v1515_v17 = vld [vmem:[#allocation5 + $0x14] ss:$8 sps:$4 sm:$0xff]   ;;  %v1517_v18 = vld [vmem:[#allocation5 + $0x10] ss:$8 sps:$4 sm:$0xff]   ;;  %v94_v19 = vld [vmem:[#allocation2 + $0x18] sm:$0xff]  ;;  %vm1790_vm0 = vmmov 0  }
  0x64   :  { %744 = vmatprep.subr.bf16.mxu0 %v1470_v4  ;;  %700 = vmatpush1.bf16.msra.mxu1 %v1511_v14  ;;  %v1487_v20 = vld [vmem:[#allocation5 + $0x170] ss:$8 sps:$4 sm:$0xff]   ;;  %v100_v21 = vpack.c.bf16 %v94_v19, %v94_v19  ;;  %v1521_v22 = vld [vmem:[#allocation5 + $0x24] ss:$8 sps:$4 sm:$0xff]   ;;  %v1523_v23 = vld [vmem:[#allocation5 + $0x20] ss:$8 sps:$4 sm:$0xff]  }
  0x65   :  { %701 = vmatprep.subr.bf16.mxu1 %v1515_v17  ;;  %v1488_v24 = vld [vmem:[#allocation5 + $0x184] ss:$8 sps:$4 sm:$0xff]   ;;  %v1527_v25 = vld [vmem:[#allocation5 + $0x34] ss:$8 sps:$4 sm:$0xff]   ;;  %v1490_v26 = vld [vmem:[#allocation5 + $0x180] ss:$8 sps:$4 sm:$0xff]  }
  0x66   :  { %772 = vmatprep.mubr.bf16.mxu0 %v100_v21  ;;  %v1529_v27 = vld [vmem:[#allocation5 + $0x30] ss:$8 sps:$4 sm:$0xff]   ;;  %v1491_v28 = vld [vmem:[#allocation5 + $0x194] ss:$8 sps:$4 sm:$0xff]   ;;  %v1533_v29 = vld [vmem:[#allocation5 + $0x44] ss:$8 sps:$4 sm:$0xff]  }
  0x67   :  { %745 = vmatpush1.bf16.msra.mxu0 %v1472_v5  ;;  %v1493_v30 = vld [vmem:[#allocation5 + $0x190] ss:$8 sps:$4 sm:$0xff]   ;;  %v1535_v31 = vld [vmem:[#allocation5 + $0x40] ss:$8 sps:$4 sm:$0xff]   ;;  %v1494_v32 = vld [vmem:[#allocation5 + $0x1a4] ss:$8 sps:$4 sm:$0xff]  }
  0x68   :  { %746 = vmatprep.subr.bf16.mxu0 %v1473_v6  ;;  %702 = vmatpush1.bf16.msra.mxu1 %v1517_v18  ;;  %v1539_v33 = vld [vmem:[#allocation5 + $0x54] ss:$8 sps:$4 sm:$0xff]   ;;  %v1496_v34 = vld [vmem:[#allocation5 + $0x1a0] ss:$8 sps:$4 sm:$0xff]   ;;  %v1541_v35 = vld [vmem:[#allocation5 + $0x50] ss:$8 sps:$4 sm:$0xff]  }
  0x69   :  { %703 = vmatprep.subr.bf16.mxu1 %v1521_v22  ;;  %v1497_v36 = vld [vmem:[#allocation5 + $0x1b4] ss:$8 sps:$4 sm:$0xff]   ;;  %v1545_v37 = vld [vmem:[#allocation5 + $0x64] ss:$8 sps:$4 sm:$0xff]   ;;  %v1499_v38 = vld [vmem:[#allocation5 + $0x1b0] ss:$8 sps:$4 sm:$0xff]  }
  0x6a   :  { %v1547_v39 = vld [vmem:[#allocation5 + $0x60] ss:$8 sps:$4 sm:$0xff]   ;;  %v1500_v40 = vld [vmem:[#allocation5 + $0x1c4] ss:$8 sps:$4 sm:$0xff]   ;;  %v1551_v41 = vld [vmem:[#allocation5 + $0x74] ss:$8 sps:$4 sm:$0xff]  }
  0x6b   :  { %747 = vmatpush1.bf16.msra.mxu0 %v1475_v7  ;;  %v1502_v42 = vld [vmem:[#allocation5 + $0x1c0] ss:$8 sps:$4 sm:$0xff]   ;;  %v1553_v43 = vld [vmem:[#allocation5 + $0x70] ss:$8 sps:$4 sm:$0xff]   ;;  %v1503_v44 = vld [vmem:[#allocation5 + $0x1d4] ss:$8 sps:$4 sm:$0xff]  }
  0x6c   :  { %748 = vmatprep.subr.bf16.mxu0 %v1476_v8  ;;  %704 = vmatpush1.bf16.msra.mxu1 %v1523_v23  ;;  %v1557_v45 = vld [vmem:[#allocation5 + $0x84] ss:$8 sps:$4 sm:$0xff]   ;;  %v1505_v46 = vld [vmem:[#allocation5 + $0x1d0] ss:$8 sps:$4 sm:$0xff]   ;;  %v1559_v47 = vld [vmem:[#allocation5 + $0x80] ss:$8 sps:$4 sm:$0xff]  }
  0x6d   :  { %705 = vmatprep.subr.bf16.mxu1 %v1527_v25  ;;  %v1506_v48 = vld [vmem:[#allocation5 + $0x1e4] ss:$8 sps:$4 sm:$0xff]   ;;  %v1563_v49 = vld [vmem:[#allocation5 + $0x94] ss:$8 sps:$4 sm:$0xff]   ;;  %v1508_v50 = vld [vmem:[#allocation5 + $0x1e0] ss:$8 sps:$4 sm:$0xff]  }
  0x6e   :  { %v1565_v51 = vld [vmem:[#allocation5 + $0x90] ss:$8 sps:$4 sm:$0xff]   ;;  %v1512_v52 = vld [vmem:[#allocation5 + $0x1f4] ss:$8 sps:$4 sm:$0xff]   ;;  %v1569_v53 = vld [vmem:[#allocation5 + $0xa4] ss:$8 sps:$4 sm:$0xff]  }
  0x6f   :  { %749 = vmatpush1.bf16.msra.mxu0 %v1478_v9  ;;  %v1514_v54 = vld [vmem:[#allocation5 + $0x1f0] ss:$8 sps:$4 sm:$0xff]   ;;  %v93_v55 = vld [vmem:[#allocation2 + $0x10] sm:$0xff]  ;;  %v1575_v58 = vld [vmem:[#allocation5 + $0xb4] ss:$8 sps:$4 sm:$0xff]  }
  0x70   :  { %750 = vmatprep.subr.bf16.mxu0 %v1479_v10  ;;  %706 = vmatpush1.bf16.msra.mxu1 %v1529_v27  ;;  %v1571_v56 = vld [vmem:[#allocation5 + $0xa0] ss:$8 sps:$4 sm:$0xff]   ;;  %v1520_v57 = vld [vmem:[#allocation5 + $0x204] ss:$8 sps:$4 sm:$0xff]   ;;  %v99_v60 = vpack.c.bf16 %v93_v55, %v93_v55  ;;  %v1526_v61 = vld [vmem:[#allocation5 + $0x214] ss:$8 sps:$4 sm:$0xff]  }
  0x71   :  { %707 = vmatprep.subr.bf16.mxu1 %v1533_v29  ;;  %v1518_v59 = vld [vmem:[#allocation5 + $0x200] ss:$8 sps:$4 sm:$0xff]   ;;  %v1577_v62 = vld [vmem:[#allocation5 + $0xb0] ss:$8 sps:$4 sm:$0xff]   ;;  %v1581_v0 = vld [vmem:[#allocation5 + $0xc4] ss:$8 sps:$4 sm:$0xff]  }
  0x72   :  { %v92_v63 = vld [vmem:[#allocation2 + $0x8] sm:$0xff]  ;;  %v1532_v4 = vld [vmem:[#allocation5 + $0x224] ss:$8 sps:$4 sm:$0xff]   ;;  %v1583_v6 = vld [vmem:[#allocation5 + $0xc0] ss:$8 sps:$4 sm:$0xff]  }
  0x73   :  { %751 = vmatpush1.bf16.msra.mxu0 %v1481_v11  ;;  %v98_v1 = vpack.c.bf16 %v92_v63, %v92_v63  ;;  %v1524_v2 = vld [vmem:[#allocation5 + $0x210] ss:$8 sps:$4 sm:$0xff]   ;;  %v1587_v7 = vld [vmem:[#allocation5 + $0xd4] ss:$8 sps:$4 sm:$0xff]   ;;  %v1530_v8 = vld [vmem:[#allocation5 + $0x220] ss:$8 sps:$4 sm:$0xff]  }
  0x74   :  { %752 = vmatprep.subr.bf16.mxu0 %v1482_v12  ;;  %708 = vmatpush1.bf16.msra.mxu1 %v1535_v31  ;;  %v96_v3 = vld [vmem:[#allocation2 + $0x28] sm:$0xff]  ;;  %v1593_v11 = vld [vmem:[#allocation5 + $0xe4] ss:$8 sps:$4 sm:$0xff]   ;;  %v1595_v14 = vld [vmem:[#allocation5 + $0xe0] ss:$8 sps:$4 sm:$0xff]  }
  0x75   :  { %709 = vmatprep.subr.bf16.mxu1 %v1539_v33  ;;  %731 = vmatprep.mubr.bf16.mxu1 %v98_v1  ;;  %v102_v5 = vpack.c.bf16 %v96_v3, %v96_v3  ;;  %v1538_v9 = vld [vmem:[#allocation5 + $0x234] ss:$8 sps:$4 sm:$0xff]   ;;  %v1589_v10 = vld [vmem:[#allocation5 + $0xd0] ss:$8 sps:$4 sm:$0xff]   ;;  %v1544_v13 = vld [vmem:[#allocation5 + $0x244] ss:$8 sps:$4 sm:$0xff]   ;;  %v201_v1 = vlaneseq }
  0x76   :  { %v1536_v12 = vld [vmem:[#allocation5 + $0x230] ss:$8 sps:$4 sm:$0xff]   ;;  %v1550_v19 = vld [vmem:[#allocation5 + $0x254] ss:$8 sps:$4 sm:$0xff]   ;;  %v1609_v22 = vld [vmem:[#allocation7] sm:$0xff]  }
  0x77   :  { %753 = vmatpush1.bf16.msra.mxu0 %v1484_v15  ;;  %v1599_v15 = vld [vmem:[#allocation5 + $0xf4] ss:$8 sps:$4 sm:$0xff]   ;;  %v1601_v17 = vld [vmem:[#allocation5 + $0xf0] ss:$8 sps:$4 sm:$0xff]   ;;  %v1556_v23 = vld [vmem:[#allocation5 + $0x264] ss:$8 sps:$4 sm:$0xff]  }
  0x78   :  { %754 = vmatprep.subr.bf16.mxu0 %v1485_v16  ;;  %710 = vmatpush1.bf16.msra.mxu1 %v1541_v35  ;;  %v1542_v16 = vld [vmem:[#allocation5 + $0x240] ss:$8 sps:$4 sm:$0xff]   ;;  %v91_v18 = vld [vmem:[#allocation2] sm:$0xff]  ;;  %v1614_v33 = vld [vmem:[#allocation7 + $0x58] sm:$0xff]  }
  0x79   :  { %711 = vmatprep.subr.bf16.mxu1 %v1545_v37  ;;  %v1548_v21 = vld [vmem:[#allocation5 + $0x250] ss:$8 sps:$4 sm:$0xff]   ;;  %v1610_v25 = vld [vmem:[#allocation7 + $0x48] sm:$0xff]   ;;  %v1616_v37 = vld [vmem:[#allocation7 + $0x60] sm:$0xff]  }
  0x7a   :  { %v1611_v27 = vld [vmem:[#allocation7 + $0x8] sm:$0xff]   ;;  %v1612_v29 = vld [vmem:[#allocation7 + $0x50] sm:$0xff]   ;;  %v1615_v35 = vld [vmem:[#allocation7 + $0x18] sm:$0xff]  }
  0x7b   :  { %755 = vmatpush1.bf16.msra.mxu0 %v1487_v20  ;;  %v1608_v20 = vld [vmem:[#allocation7 + $0x40] sm:$0xff]   ;;  %v1613_v31 = vld [vmem:[#allocation7 + $0x10] sm:$0xff]   ;;  %v1619_v55 = vld [vmem:[#allocation7 + $0x28] sm:$0xff]  }
  0x7c   :  { %756 = vmatprep.subr.bf16.mxu0 %v1488_v24  ;;  %712 = vmatpush1.bf16.msra.mxu1 %v1547_v39  ;;  %v97_v24 = vpack.c.bf16 %v91_v18, %v91_v18  ;;  %v1617_v39 = vld [vmem:[#allocation7 + $0x20] sm:$0xff]  }
  0x7d   :  { %713 = vmatprep.subr.bf16.mxu1 %v1551_v41  ;;  %v1578_v41 = vld [vmem:[#allocation5 + $0x2a0] ss:$8 sps:$4 sm:$0xff]  }
  0x7f   :  { %757 = vmatpush1.bf16.msra.mxu0 %v1490_v26  ;;  %v1554_v26 = vld [vmem:[#allocation5 + $0x260] ss:$8 sps:$4 sm:$0xff]  }
  0x80   :  { %758 = vmatprep.subr.bf16.mxu0 %v1491_v28  ;;  %714 = vmatpush1.bf16.msra.mxu1 %v1553_v43  ;;  %v1562_v28 = vld [vmem:[#allocation5 + $0x274] ss:$8 sps:$4 sm:$0xff]   ;;  %v1584_v43 = vld [vmem:[#allocation5 + $0x2b0] ss:$8 sps:$4 sm:$0xff]  }
  0x81   :  { %715 = vmatprep.subr.bf16.mxu1 %v1557_v45  ;;  %v1590_v45 = vld [vmem:[#allocation5 + $0x2c0] ss:$8 sps:$4 sm:$0xff]  }
  0x83   :  { %759 = vmatpush1.bf16.msra.mxu0 %v1493_v30  ;;  %v1560_v30 = vld [vmem:[#allocation5 + $0x270] ss:$8 sps:$4 sm:$0xff]  }
  0x84   :  { %760 = vmatprep.subr.bf16.mxu0 %v1494_v32  ;;  %716 = vmatpush1.bf16.msra.mxu1 %v1559_v47  ;;  %v1568_v32 = vld [vmem:[#allocation5 + $0x284] ss:$8 sps:$4 sm:$0xff]   ;;  %v1596_v47 = vld [vmem:[#allocation5 + $0x2d0] ss:$8 sps:$4 sm:$0xff]  }
  0x85   :  { %717 = vmatprep.subr.bf16.mxu1 %v1563_v49  ;;  %v1602_v49 = vld [vmem:[#allocation5 + $0x2e0] ss:$8 sps:$4 sm:$0xff]  }
  0x87   :  { %761 = vmatpush1.bf16.msra.mxu0 %v1496_v34  ;;  %v1566_v34 = vld [vmem:[#allocation5 + $0x280] ss:$8 sps:$4 sm:$0xff]  }
  0x88   :  { %762 = vmatprep.subr.bf16.mxu0 %v1497_v36  ;;  %718 = vmatpush1.bf16.msra.mxu1 %v1565_v51  ;;  %v1574_v36 = vld [vmem:[#allocation5 + $0x294] ss:$8 sps:$4 sm:$0xff]   ;;  %v1605_v51 = vld [vmem:[#allocation5 + $0x2f0] ss:$8 sps:$4 sm:$0xff]  }
  0x89   :  { %719 = vmatprep.subr.bf16.mxu1 %v1569_v53 }
  0x8b   :  { %763 = vmatpush1.bf16.msra.mxu0 %v1499_v38  ;;  %v1572_v38 = vld [vmem:[#allocation5 + $0x290] ss:$8 sps:$4 sm:$0xff]  }
  0x8c   :  { %764 = vmatprep.subr.bf16.mxu0 %v1500_v40  ;;  %720 = vmatpush1.bf16.msra.mxu1 %v1571_v56  ;;  %v1580_v40 = vld [vmem:[#allocation5 + $0x2a4] ss:$8 sps:$4 sm:$0xff]   ;;  %v1620_v56 = vld [vmem:[#allocation7 + $0x70] sm:$0xff]  }
  0x8d   :  { %721 = vmatprep.subr.bf16.mxu1 %v1575_v58  ;;  %v1622_v58 = vld [vmem:[#allocation7 + $0x78] sm:$0xff]  }
  0x8f   :  { %765 = vmatpush1.bf16.msra.mxu0 %v1502_v42  ;;  %v1586_v42 = vld [vmem:[#allocation5 + $0x2b4] ss:$8 sps:$4 sm:$0xff]  }
  0x90   :  { %766 = vmatprep.subr.bf16.mxu0 %v1503_v44  ;;  %722 = vmatpush1.bf16.msra.mxu1 %v1577_v62  ;;  %v1592_v44 = vld [vmem:[#allocation5 + $0x2c4] ss:$8 sps:$4 sm:$0xff]  }
  0x91   :  { %723 = vmatprep.subr.bf16.mxu1 %v1581_v0 }
  0x93   :  { %767 = vmatpush1.bf16.msra.mxu0 %v1505_v46  ;;  %v1598_v46 = vld [vmem:[#allocation5 + $0x2d4] ss:$8 sps:$4 sm:$0xff]  }
  0x94   :  { %768 = vmatprep.subr.bf16.mxu0 %v1506_v48  ;;  %724 = vmatpush1.bf16.msra.mxu1 %v1583_v6  ;;  %v1604_v48 = vld [vmem:[#allocation5 + $0x2e4] ss:$8 sps:$4 sm:$0xff]  }
  0x95   :  { %725 = vmatprep.subr.bf16.mxu1 %v1587_v7 }
  0x97   :  { %769 = vmatpush1.bf16.msra.mxu0 %v1508_v50  ;;  %v1607_v50 = vld [vmem:[#allocation5 + $0x2f4] ss:$8 sps:$4 sm:$0xff]  }
  0x98   :  { %770 = vmatprep.subr.bf16.mxu0 %v1512_v52  ;;  %726 = vmatpush1.bf16.msra.mxu1 %v1589_v10  ;;  %v95_v52 = vld [vmem:[#allocation2 + $0x20] sm:$0xff] }
  0x99   :  { %727 = vmatprep.subr.bf16.mxu1 %v1593_v11  ;;  %v101_v53 = vpack.c.bf16 %v95_v52, %v95_v52 }
  0x9b   :  { %771 = vmatpush1.bf16.msra.mxu0 %v1514_v54  ;;  %v1618_v54 = vld [vmem:[#allocation7 + $0x68] sm:$0xff]  }
  0x9c   :  { %781 = vmatprep.subr.bf16.mxu0 %v1520_v57  ;;  %728 = vmatpush1.bf16.msra.mxu1 %v1595_v14  ;;  %v1621_v57 = vld [vmem:[#allocation7 + $0x30] sm:$0xff]  }
  0x9d   :  { %729 = vmatprep.subr.bf16.mxu1 %v1599_v15 }
  0x9e   :  { %773 = vmatmul.mubr.bf16.vlgmr.msra.gmra.mrb[0].mxu0 %v99_v60  ;;  %v1789_v60 = vmov 0.0  }
  0x9f   :  { %782 = vmatpush1.bf16.msra.mxu0 %v1518_v59  ;;  %813 = vmatprep.mubr.bf16.mxu0 %v102_v5  ;;  %v1623_v59 = vld [vmem:[#allocation7 + $0x38] sm:$0xff]  }
  0xa0   :  { %783 = vmatprep.subr.bf16.mxu0 %v1526_v61  ;;  %730 = vmatpush1.bf16.msra.mxu1 %v1601_v17 }
  0xa1   :  { %1364 = vmatprep.subr.bf16.mxu1 %v1608_v20 }
  0xa3   :  { %784 = vmatpush1.bf16.msra.mxu0 %v1524_v2  ;;  %732 = vmatmul.mubr.bf16.vlgmr.msra.gmra.mrb[0].mxu1 %v97_v24  ;;  %v1900_v2 = vshrl.u32 %v201_v1, 7  ;;  %v1626_v24 = vld [vmem:[#allocation8 + $0x10] sm:$0xff]  }
  0xa4   :  { %785 = vmatprep.subr.bf16.mxu0 %v1532_v4  ;;  %1365 = vmatpush3.bf16.msra.mxu1 %v1609_v22  ;;  %v1906_v4 = vld [vmem:[%s1953_s5] sm:$0xff]  ;;  %s1791_s5 = smov [#allocation11]  }
  0xa5   :  { %1366 = vmatprep.subr.bf16.mxu1 %v1610_v25  ;;  %v203_v3 = vsub.s32 0, %v1900_v2  ;;  %v207_v5 = vsub.s32 4, %v1900_v2  ;;  %v1627_v25 = vld [vmem:[#allocation8 + $0x18] sm:$0xff]   ;;  %s1225_s26 = sshll.u32 %s1791_s5, 4  ;;  %s1226_s26 = int_to_ptr.vmem [resolvable:$true] %s1225_s26 }
  0xa6   :  { %s1750_s3 = scalar_lea.vmem %s1226_s26, 128  ;;  %p1755_p1 = scmp.lt.s32.totalorder %s1226_s26, %s1226_s26 }
  0xa7   :  { %786 = vmatpush1.bf16.msra.mxu0 %v1530_v8  ;;  %v204_v6 = vrot.slane %v1906_v4, %v203_v3  ;;  %v208_v7 = vrot.slane %v1906_v4, %v207_v5  ;;  %p1751_p0 = scmp.ne.s32.totalorder %s1226_s26, %s1750_s3  ;;  %p1756_p2 = scmp.lt.s32.totalorder %s1750_s3, %s1750_s3 }
  0xa8   :  { %787 = vmatprep.subr.bf16.mxu0 %v1538_v9  ;;  %1367 = vmatpush3.bf16.msra.mxu1 %v1611_v27  ;;  %v1629_v27 = vld [vmem:[#allocation8 + $0x28] sm:$0xff]  }
  0xa9   :  { %1368 = vmatprep.subr.bf16.mxu1 %v1612_v29  ;;  %v214_v8 = vrot.slane %v204_v6, %v203_v3  ;;  %v218_v9 = vrot.slane %v208_v7, %v203_v3  ;;  %v1631_v29 = vld [vmem:[#allocation8 + $0x38] sm:$0xff]   ;;  %p1757_p3 = por %p1756_p2, %p1755_p1 }
  0xab   :  { %788 = vmatpush1.bf16.msra.mxu0 %v1536_v12  ;;  %p1758_p4 = pnand %p1757_p3, %p1751_p0 }
  0xac   :  { %789 = vmatprep.subr.bf16.mxu0 %v1544_v13  ;;  %1369 = vmatpush3.bf16.msra.mxu1 %v1613_v31 }
  0xad   :  { %1370 = vmatprep.subr.bf16.mxu1 %v1614_v33 }
  0xaf   :  { %790 = vmatpush1.bf16.msra.mxu0 %v1542_v16 }
  0xb0   :  { %791 = vmatprep.subr.bf16.mxu0 %v1550_v19  ;;  %1371 = vmatpush3.bf16.msra.mxu1 %v1615_v35 }
  0xb1   :  { %1372 = vmatprep.subr.bf16.mxu1 %v1616_v37 }
  0xb3   :  { %792 = vmatpush1.bf16.msra.mxu0 %v1548_v21  ;;  %v1624_v21 = vld [vmem:[#allocation8] sm:$0xff]  }
  0xb4   :  { %793 = vmatprep.subr.bf16.mxu0 %v1556_v23  ;;  %1373 = vmatpush3.bf16.msra.mxu1 %v1617_v39  ;;  %v1625_v23 = vld [vmem:[#allocation8 + $0x8] sm:$0xff]   ;;  %v1632_v39 = vld [vmem:[#allocation10] sm:$0xff]  }
  0xb5   :  { %1374 = vmatprep.subr.bf16.mxu1 %v1618_v54 }
  0xb7   :  { %794 = vmatpush1.bf16.msra.mxu0 %v1554_v26  ;;  %v1628_v26 = vld [vmem:[#allocation8 + $0x20] sm:$0xff]  }
  0xb8   :  { %795 = vmatprep.subr.bf16.mxu0 %v1562_v28  ;;  %1375 = vmatpush3.bf16.msra.mxu1 %v1619_v55  ;;  %v1630_v28 = vld [vmem:[#allocation8 + $0x30] sm:$0xff]  }
  0xb9   :  { %1376 = vmatprep.subr.bf16.mxu1 %v1620_v56 }
  0xbb   :  { %796 = vmatpush1.bf16.msra.mxu0 %v1560_v30  ;;  %v860_v30 = vsub.s32 1, %v1900_v2 }
  0xbc   :  { %797 = vmatprep.subr.bf16.mxu0 %v1568_v32  ;;  %1377 = vmatpush3.bf16.msra.mxu1 %v1621_v57  ;;  %v1128_v57 = vsub.s32 3, %v1900_v2 }
  0xbd   :  { %1378 = vmatprep.subr.bf16.mxu1 %v1622_v58  ;;  %v861_v32 = vrot.slane %v1906_v4, %v860_v30 }
  0xbe   :  { %v1129_v58 = vrot.slane %v1906_v4, %v1128_v57 }
  0xbf   :  { %798 = vmatpush1.bf16.msra.mxu0 %v1566_v34 }
  0xc0   :  { %799 = vmatprep.subr.bf16.mxu0 %v1574_v36  ;;  %1379 = vmatpush3.bf16.msra.mxu1 %v1623_v59 }
  0xc1   :  { %1404 = vmatprep.subr.bf16.mxu1 %v1789_v60 }
  0xc3   :  { %800 = vmatpush1.bf16.msra.mxu0 %v1572_v38 }
  0xc4   :  { %801 = vmatprep.subr.bf16.mxu0 %v1580_v40 }
  0xc7   :  { %802 = vmatpush1.bf16.msra.mxu0 %v1578_v41  ;;  %v1633_v41 = vld [vmem:[#allocation10 + $0x8] sm:$0xff]  }
  0xc8   :  { %803 = vmatprep.subr.bf16.mxu0 %v1586_v42  ;;  %v1634_v42 = vld [vmem:[#allocation10 + $0x10] sm:$0xff]  }
  0xcb   :  { %804 = vmatpush1.bf16.msra.mxu0 %v1584_v43  ;;  %v1635_v43 = vld [vmem:[#allocation10 + $0x18] sm:$0xff]  }
  0xcc   :  { %805 = vmatprep.subr.bf16.mxu0 %v1592_v44  ;;  %v1636_v44 = vld [vmem:[#allocation10 + $0x20] sm:$0xff]  }
  0xcf   :  { %806 = vmatpush1.bf16.msra.mxu0 %v1590_v45  ;;  %v1637_v45 = vld [vmem:[#allocation10 + $0x28] sm:$0xff]  }
  0xd0   :  { %807 = vmatprep.subr.bf16.mxu0 %v1598_v46  ;;  %v1638_v46 = vld [vmem:[#allocation10 + $0x30] sm:$0xff]  }
  0xd3   :  { %808 = vmatpush1.bf16.msra.mxu0 %v1596_v47  ;;  %v1639_v47 = vld [vmem:[#allocation10 + $0x38] sm:$0xff]  }
  0xd4   :  { %809 = vmatprep.subr.bf16.mxu0 %v1604_v48  ;;  %v1018_v48 = vsub.s32 2, %v1900_v2 }
  0xd7   :  { %810 = vmatpush1.bf16.msra.mxu0 %v1602_v49  ;;  %v1019_v49 = vrot.slane %v1906_v4, %v1018_v48 }
  0xd8   :  { %811 = vmatprep.subr.bf16.mxu0 %v1607_v50 }
  0xdb   :  { %812 = vmatpush1.bf16.msra.mxu0 %v1605_v51 }
  0xde   :  { %814 = vmatmul.mubr.bf16.vlgmr.msra.gmra.mrb[0].mxu0 %v101_v53 }
 0x176   :  { %v733_v61 = vpop.f32.mrb[0].mxu1 }
 0x177   :  { %v735_v62 = vpop.f32.mrb[1].mxu1  ;;  %v734_v10 = vadd.f32 %v733_v61, %v214_v8 }
 0x178   :  { %v737_v63 = vpop.f32.mrb[2].mxu1  ;;  %v736_v11 = vadd.f32 %v735_v62, %v218_v9 }
 0x179   :  { %v738_v0 = vpop.f32.mrb[3].mxu1 }
 0x1b1   :  { %v815_v12 = vpop.f32.mrb[0].mxu0 }
 0x1b2   :  { %v1445_v13 = vadd.f32 %v815_v12, %v734_v10  ;;  %v817_v14 = vpop.f32.mrb[1].mxu0 }
 0x1b3   :  { %v1447_v15 = vadd.f32 %v817_v14, %v736_v11  ;;  %v819_v16 = vpop.f32.mrb[2].mxu0 }
 0x1b4   :  { %v822_v17 = vmax.f32 %v1445_v13, 0.0  ;;  %v820_v18 = vpop.f32.mrb[3].mxu0 }
 0x1b5   :  { %v823_v19 = vmax.f32 %v1447_v15, 0.0 }
 0x1b6   :  { %v824_v22 = vpack.c.bf16 %v822_v17, %v822_v17 }
 0x1b7   :  { %v825_v20 = vpack.c.bf16 %v823_v19, %v823_v19 }
 0x1b9   :  { %990 = vmatprep.mubr.bf16.mxu1 %v825_v20 }
 0x1ba   :  { %991 = vmatmul.mubr.bf16.vlgmr.msra.gmra.mrb[4].mxu1 %v824_v22 }
 0x1bb   :  { %1405 = vmatpush3.bf16.msra.mxu1 %v1624_v21  ;;  %1420 = vmatprep.mubr.msk.bf16.mxu1 %vm1790_vm0, %v1789_v60 }
 0x1bc   :  { %1406 = vmatprep.subr.bf16.mxu1 %v1789_v60 }
 0x1bf   :  { %1407 = vmatpush3.bf16.msra.mxu1 %v1625_v23 }
 0x1c0   :  { %1408 = vmatprep.subr.bf16.mxu1 %v1789_v60 }
 0x1c3   :  { %1409 = vmatpush3.bf16.msra.mxu1 %v1626_v24 }
 0x1c4   :  { %1410 = vmatprep.subr.bf16.mxu1 %v1789_v60 }
 0x1c7   :  { %1411 = vmatpush3.bf16.msra.mxu1 %v1627_v25 }
 0x1c8   :  { %1412 = vmatprep.subr.bf16.mxu1 %v1789_v60 }
 0x1cb   :  { %1413 = vmatpush3.bf16.msra.mxu1 %v1628_v26 }
 0x1cc   :  { %1414 = vmatprep.subr.bf16.mxu1 %v1789_v60 }
 0x1cf   :  { %1415 = vmatpush3.bf16.msra.mxu1 %v1629_v27 }
 0x1d0   :  { %1416 = vmatprep.subr.bf16.mxu1 %v1789_v60 }
 0x1d3   :  { %1417 = vmatpush3.bf16.msra.mxu1 %v1630_v28 }
 0x1d4   :  { %1418 = vmatprep.subr.bf16.mxu1 %v1789_v60 }
 0x1d7   :  { %1419 = vmatpush3.bf16.msra.mxu1 %v1631_v29 }
 0x1d8   :  { %1424 = vmatprep.subr.bf16.mxu1 %v1789_v60 }
 0x28d   :  { %v1380_v31 = vpop.f32.mrb[4].mxu1 }
 0x28e   :  { %v1381_v33 = vpop.f32.mrb[5].mxu1 }
 0x28f   :  { %v1382_v34 = vadd.f32 %v1381_v33, %v1380_v31  ;;  %v1383_v35 = vpop.f32.mrb[6].mxu1 }
 0x290   :  { %v1384_v36 = vpop.f32.mrb[7].mxu1 }
 0x291   :  { %v993_v37 = vadd.f32 %v1382_v34, %v861_v32 }
 0x293   :  { %v998_v38 = vmax.f32 %v993_v37, 0.0 }
 0x295   :  { %v999_v40 = vpack.c.bf16 %v998_v38, %v998_v38 }
 0x297   :  { %1421 = vmatmul.mubr.bf16.vlgmr.msra.gmra.mrb[8].mxu1 %v999_v40 }
 0x298   :  { %1425 = vmatpush3.bf16.msra.mxu1 %v1632_v39  ;;  %1440 = vmatprep.mubr.msk.bf16.mxu1 %vm1790_vm0, %v1789_v60 }
 0x299   :  { %1426 = vmatprep.subr.bf16.mxu1 %v1789_v60 }
 0x29c   :  { %1427 = vmatpush3.bf16.msra.mxu1 %v1633_v41 }
 0x29d   :  { %1428 = vmatprep.subr.bf16.mxu1 %v1789_v60 }
 0x2a0   :  { %1429 = vmatpush3.bf16.msra.mxu1 %v1634_v42 }
 0x2a1   :  { %1430 = vmatprep.subr.bf16.mxu1 %v1789_v60 }
 0x2a4   :  { %1431 = vmatpush3.bf16.msra.mxu1 %v1635_v43 }
 0x2a5   :  { %1432 = vmatprep.subr.bf16.mxu1 %v1789_v60 }
 0x2a8   :  { %1433 = vmatpush3.bf16.msra.mxu1 %v1636_v44 }
 0x2a9   :  { %1434 = vmatprep.subr.bf16.mxu1 %v1789_v60 }
 0x2ac   :  { %1435 = vmatpush3.bf16.msra.mxu1 %v1637_v45 }
 0x2ad   :  { %1436 = vmatprep.subr.bf16.mxu1 %v1789_v60 }
 0x2b0   :  { %1437 = vmatpush3.bf16.msra.mxu1 %v1638_v46 }
 0x2b1   :  { %1438 = vmatprep.subr.bf16.mxu1 %v1789_v60 }
 0x2b4   :  { %1439 = vmatpush3.bf16.msra.mxu1 %v1639_v47 }
 0x36a   :  { %v1102_v50 = vpop.f32.mrb[8].mxu1 }
 0x36b   :  { %v1103_v51 = vadd.f32 %v1102_v50, %v1019_v49  ;;  %v1422_v52 = vpop.f32.mrb[9].mxu1 }
 0x36c   :  { %v1105_v53 = vpop.f32.mrb[10].mxu1 }
 0x36d   :  { %v1108_v54 = vmax.f32 %v1103_v51, 0.0  ;;  %v1423_v55 = vpop.f32.mrb[11].mxu1 }
 0x36f   :  { %v1109_v56 = vpack.c.bf16 %v1108_v54, %v1108_v54 }
 0x371   :  { %1441 = vmatmul.mubr.bf16.vlgmr.msra.gmra.mrb[12].mxu1 %v1109_v56 }
 0x444   :  { %v1212_v59 = vpop.f32.mrb[12].mxu1 }
 0x445   :  { %v1213_v60 = vadd.f32 %v1212_v59, %v1129_v58  ;;  %v1442_v61 = vpop.f32.mrb[13].mxu1 }
 0x446   :  { %v1215_v62 = vpop.f32.mrb[14].mxu1 }
 0x447   :  { %1218 = vst [vmem:[#allocation11] sm:$0xff] %v1213_v60  ;;  %v1443_v63 = vpop.f32.mrb[15].mxu1 }
 0x448   :  { %1761 = shalt.err (!%p1758_p4)
}
 0x449   :  { %s1762_s15 = scalar_lea.hbm %s1954_s6, 128 }
 0x44a   :  { %p1763_p5 = scmp.ne.s32.totalorder %s1954_s6, %s1762_s15  ;;  %p1766_p6 = scmp.lt.u32.totalorder %s1762_s15, %s1954_s6 }
 0x44c   :  { %p1768_p7 = pnand %p1766_p6, %p1763_p5 }
 0x44e   :  { %1771 = shalt.err (!%p1768_p7)
}
 0x44f   :  { %1228 = dma.vmem_to_hbm [thread:$0]  %s1226_s26, 128, %s1954_s6, [#allocation4]  }
 0x450   :  { %1778 = dma.done.wait [#allocation4], 128  }
 0x451   :  { %1779 = vsyncadd [#allocation4], 4294967168 }
 0x452   :  { %1232 = vsyncpa [#allocation3], 1 }
 0x453   :  { %1233 = vsyncpa [#allocation6], 1 }
 0x454   :  { %1234 = vsyncpa [#allocation9], 1 }
 0x455   :  { %1235 = vsyncpa [#allocation4], 1 }

</bundles_post_ra>
